<compile_context>
chip_gen: v7x
topology: tpu7x:2x2x1
jax: 0.10.0
libtpu: 0.0.40
codegen_flags: <defaults>
</compile_context>

<pallas_src>
import functools

import numpy as np
import jax
import jax.numpy as jnp
from jax import lax
from jax.experimental import pallas as pl
from jax.experimental.pallas import tpu as pltpu


def _round_up(a, b):
    return (a + b - 1) // b * b


# ----------------------------------------------------------------------------
# Pallas tiled matmul with fused per-column bias epilogue
#   (bf16 MXU inputs, f32 accumulation, bias applied in the finalize step)
# ----------------------------------------------------------------------------
def _matmul_bias_kernel(x_ref, w_ref, b_ref, o_ref, acc_ref):
    @pl.when(pl.program_id(2) == 0)
    def _():
        acc_ref[...] = jnp.zeros_like(acc_ref)

    acc_ref[...] += jnp.dot(x_ref[...], w_ref[...],
                            preferred_element_type=jnp.float32)

    @pl.when(pl.program_id(2) == pl.num_programs(2) - 1)
    def _():
        # fused epilogue: per-output-channel bias (folded BatchNorm shift)
        o_ref[...] = (acc_ref[...] + b_ref[...]).astype(o_ref.dtype)


def pallas_matmul(x, w, bias, *, out_dtype=jnp.bfloat16, tm=256, tn=512, tk=512):
    """y = x @ w + bias.  x: (M, K), w: (K, N), bias: (N,) -> (M, N) out_dtype.

    Pads only when a dimension cannot be expressed as a legal full-dim /
    (8,128)-aligned block (review: avoid pad-then-slice HBM round trips).
    """
    M, K = x.shape
    K2, N = w.shape
    assert K == K2 and bias.shape == (N,)

    # M: sublane multiple of 16 (bf16 packing).
    Mp = M if M % 16 == 0 else _round_up(M, 16)
    # N: <=128 -> use the full dim as the lane block (no pad); else 128-align.
    Np = N if N <= 128 else _round_up(N, 128)
    # K: if it fits one tile, use it as a full-dim block (no zero-pad to 128).
    tk = min(tk, _round_up(K, 128))
    Kp = K if K <= tk else _round_up(K, tk)
    tk = min(tk, Kp)
    tm = min(tm, Mp)
    tn = min(tn, Np)
    Mp = _round_up(Mp, tm)
    Np = _round_up(Np, tn)

    xb = x.astype(jnp.bfloat16)
    wb = w.astype(jnp.bfloat16)
    bb = bias.astype(jnp.float32).reshape(1, N)
    if (Mp, Kp) != (M, K):
        xb = jnp.pad(xb, ((0, Mp - M), (0, Kp - K)))
    if (Kp, Np) != (K, N):
        wb = jnp.pad(wb, ((0, Kp - K), (0, Np - N)))
    if Np != N:
        bb = jnp.pad(bb, ((0, 0), (0, Np - N)))

    grid = (Mp // tm, Np // tn, Kp // tk)
    cost = pl.CostEstimate(
        flops=2 * Mp * Np * Kp,
        transcendentals=0,
        bytes_accessed=(Mp * Kp + Kp * Np) * 2 + Np * 4
                       + Mp * Np * np.dtype(out_dtype).itemsize,
    )
    out = pl.pallas_call(
        _matmul_bias_kernel,
        out_shape=jax.ShapeDtypeStruct((Mp, Np), out_dtype),
        grid=grid,
        in_specs=[pl.BlockSpec((tm, tk), lambda i, j, k: (i, k)),
                  pl.BlockSpec((tk, tn), lambda i, j, k: (k, j)),
                  pl.BlockSpec((1, tn), lambda i, j, k: (0, j))],
        out_specs=pl.BlockSpec((tm, tn), lambda i, j, k: (i, j)),
        scratch_shapes=[pltpu.VMEM((tm, tn), jnp.float32)],
        compiler_params=pltpu.CompilerParams(
            dimension_semantics=("parallel", "parallel", "arbitrary"),
            # actual double-buffered footprint at default tiles ~2.5 MiB;
            # limit kept below v7x's 64 MiB physical VMEM per TC.
            vmem_limit_bytes=48 * 1024 * 1024),
        cost_estimate=cost,
    )(xb, wb, bb)
    if (Mp, Np) != (M, N):
        out = out[:M, :N]
    return out


# ----------------------------------------------------------------------------
# Pallas windowed attention, fed directly from the NHWC fused-conv output
#   one (ws x ws) window per grid step, all heads; f32 softmax; q pre-scaled
# ----------------------------------------------------------------------------
def _window_attn_kernel(x_ref, bias_ref, o_ref, *, num_heads, head_dim, dim):
    # x_ref: (1, ws, ws, 4C) bf16 = [q*scale | k | v | local2] channels-last.
    _, ws1, ws2, c4 = x_ref.shape
    n = ws1 * ws2
    xw = x_ref[...].reshape(n, c4)              # collapse majors only (free)
    q = xw[:, :dim]                             # already scaled by head_dim**-0.5
    k = xw[:, dim:2 * dim]
    v = xw[:, 2 * dim:3 * dim]

    # Per-head loop keeps only one (n, n) f32 slab live at a time
    # (review: bound live intermediates / avoid vreg spills).
    head_outs = []
    for h in range(num_heads):
        lo = h * head_dim
        hi = lo + head_dim
        dots = lax.dot_general(q[:, lo:hi], k[:, lo:hi],
                               (((1,), (1,)), ((), ())),
                               preferred_element_type=jnp.float32)   # (n, n)
        dots = dots + bias_ref[h]
        dots = dots - jnp.max(dots, axis=-1, keepdims=True)
        p = jnp.exp(dots)
        p = p * pl.reciprocal(jnp.sum(p, axis=-1, keepdims=True), approx=True)
        head_outs.append(jnp.dot(p.astype(v.dtype), v[:, lo:hi],
                                 preferred_element_type=jnp.float32))
    o = jnp.concatenate(head_outs, axis=-1)      # (n, C) f32
    o_ref[...] = o.reshape(1, ws1, ws2, dim).astype(o_ref.dtype)


def window_attention(fused_nhwc, bias, *, num_heads, head_dim, dim, window_size):
    """fused_nhwc: (B, Hp, Wp, 4C) bf16; bias: (heads, N, N) f32 ->
    (B, Hp, Wp, C) f32 attention output written directly in NHWC."""
    B, Hp, Wp, c4 = fused_nhwc.shape
    ws = window_size
    hh, ww = Hp // ws, Wp // ws
    n = ws * ws
    kernel = functools.partial(_window_attn_kernel, num_heads=num_heads,
                               head_dim=head_dim, dim=dim)
    cost = pl.CostEstimate(
        flops=4 * B * hh * ww * num_heads * n * n * head_dim,
        transcendentals=B * hh * ww * num_heads * n * n,
        bytes_accessed=B * Hp * Wp * c4 * 2 + num_heads * n * n * 4
                       + B * Hp * Wp * dim * 4,
    )
    return pl.pallas_call(
        kernel,
        out_shape=jax.ShapeDtypeStruct((B, Hp, Wp, dim), jnp.float32),
        grid=(B, hh, ww),                        # >= 2 parallel steps (megacore)
        in_specs=[pl.BlockSpec((1, ws, ws, c4), lambda b, i, j: (b, i, j, 0)),
                  # constant block index -> rel-pos bias DMA'd once, not per step
                  pl.BlockSpec((num_heads, n, n), lambda b, i, j: (0, 0, 0))],
        out_specs=pl.BlockSpec((1, ws, ws, dim), lambda b, i, j: (b, i, j, 0)),
        compiler_params=pltpu.CompilerParams(
            dimension_semantics=("parallel", "parallel", "parallel")),
        cost_estimate=cost,
    )(fused_nhwc, bias)


# ----------------------------------------------------------------------------
# NHWC glue ops (plain JAX / XLA) built around the Pallas kernels
# ----------------------------------------------------------------------------
def _avg_pool_nhwc(x, kh, kw, ph, pw):
    """AvgPool2d, count_include_pad=True (PyTorch default), NHWC."""
    s = lax.reduce_window(x, 0.0, lax.add,
                          (1, kh, kw, 1), (1, 1, 1, 1),
                          [(0, 0), (ph, ph), (pw, pw), (0, 0)])
    return s / float(kh * kw)


def _bn_fold(bn, eps=1e-5):
    gamma, beta, mean, var = bn
    s = gamma * lax.rsqrt(var + eps)
    return s, beta - mean * s


def _relative_position_index(ws):
    coords = np.stack(np.meshgrid(np.arange(ws), np.arange(ws), indexing='ij'))
    coords_flatten = coords.reshape(2, -1)
    rel = coords_flatten[:, :, None] - coords_flatten[:, None, :]
    rel = rel.transpose(1, 2, 0).copy()
    rel[:, :, 0] += ws - 1
    rel[:, :, 1] += ws - 1
    rel[:, :, 0] *= 2 * ws - 1
    return rel.sum(-1)  # (ws*ws, ws*ws)


# ----------------------------------------------------------------------------
# Forward pass (NHWC internally; NCHW at the module boundary only)
# ----------------------------------------------------------------------------
def global_local_attention_forward(x, params, *, num_heads, window_size):
    B, C, H, W = x.shape
    ws = window_size
    head_dim = C // num_heads
    scale = head_dim ** -0.5

    xh = jnp.transpose(x, (0, 2, 3, 1))                    # (B, H, W, C) NHWC

    # ---- local1: 3x3 conv + BN, BN folded into conv weight / additive shift
    s1, t1 = _bn_fold(params['local1_bn'])
    w1 = jnp.transpose(params['local1_w'], (2, 3, 1, 0)) * s1        # HWIO
    l1 = lax.conv_general_dilated(
        xh, w1, (1, 1), [(1, 1), (1, 1)],
        dimension_numbers=('NHWC', 'HWIO', 'NHWC')) + t1

    # ---- reflect-pad to a window multiple (only if needed)
    xp = xh
    if W % ws:
        xp = jnp.pad(xp, ((0, 0), (0, 0), (0, ws - W % ws), (0, 0)), mode='reflect')
    if H % ws:
        xp = jnp.pad(xp, ((0, 0), (0, ws - H % ws), (0, 0), (0, 0)), mode='reflect')
    Hp, Wp = xp.shape[1], xp.shape[2]
    N = ws * ws

    # ---- fused 1x1 convs in ONE Pallas matmul over the pixel slab:
    #      columns = [q*scale | k | v | local2*BNscale], BN shift applied in
    #      the matmul's finalize epilogue, bf16 output (halved HBM writeback).
    s2, t2 = _bn_fold(params['local2_bn'])
    w_fused = jnp.concatenate([params['qkv_w'][:C] * scale,
                               params['qkv_w'][C:],
                               params['local2_w'] * s2[:, None]], axis=0)   # (4C, C)
    bias_fused = jnp.concatenate([jnp.zeros((3 * C,), jnp.float32), t2])
    fused = pallas_matmul(xp.reshape(B * Hp * Wp, C), w_fused.T, bias_fused,
                          out_dtype=jnp.bfloat16)
    fused = fused.reshape(B, Hp, Wp, 4 * C)                # free reshape (NHWC)

    # local2 (already BatchNorm'ed) + local1; 1x1 conv on padded grid + crop is exact
    local = l1 + fused[:, :H, :W, 3 * C:].astype(jnp.float32)

    # ---- relative position bias: (heads, N, N)
    bias = params['rel_pos_table'][params['rel_pos_index'].reshape(-1)]
    bias = bias.reshape(N, N, num_heads).transpose(2, 0, 1).astype(jnp.float32)

    # ---- windowed attention, fed directly from the fused NHWC tensor
    #      (the extra local2 columns in each block are ignored in-kernel).
    attn = window_attention(fused, bias, num_heads=num_heads, head_dim=head_dim,
                            dim=C, window_size=ws)         # (B, Hp, Wp, C) f32
    if (Hp, Wp) != (H, W):
        attn = attn[:, :H, :W]

    # ---- attn_x / attn_y: reflect pad + AvgPool2d
    ax = _avg_pool_nhwc(jnp.pad(attn, ((0, 0), (0, 1), (0, 0), (0, 0)), mode='reflect'),
                        ws, 1, ws // 2 - 1, 0)
    ay = _avg_pool_nhwc(jnp.pad(attn, ((0, 0), (0, 0), (0, 1), (0, 0)), mode='reflect'),
                        1, ws, 0, ws // 2 - 1)
    out = ax + ay + local

    # ---- pad_out + proj: depthwise ws x ws conv, then BN folded entirely
    #      into the 1x1 pointwise Pallas matmul (scale on its input columns,
    #      shift pushed through as a per-output-channel bias).
    out = jnp.pad(out, ((0, 0), (0, 1), (0, 1), (0, 0)), mode='reflect')
    dpad = (ws - 1) // 2
    wd = jnp.transpose(params['proj_dw_w'], (2, 3, 1, 0))  # (ws, ws, 1, C)
    out = lax.conv_general_dilated(
        out, wd, (1, 1), [(dpad, dpad), (dpad, dpad)],
        dimension_numbers=('NHWC', 'HWIO', 'NHWC'),
        feature_group_count=C)
    sp, tp = _bn_fold(params['proj_bn'])
    w_pw = params['proj_pw_w'] * sp[None, :]               # scale input-channel cols
    bias_pw = params['proj_pw_w'] @ tp                     # constant output bias
    Ho, Wo = out.shape[1], out.shape[2]
    y = pallas_matmul(out.reshape(B * Ho * Wo, C), w_pw.T, bias_pw,
                      out_dtype=jnp.float32)
    y = y.reshape(B, Ho, Wo, C)
    if (Ho, Wo) != (H, W):
        y = y[:, :H, :W]
    return jnp.transpose(y, (0, 3, 1, 2))                  # back to NCHW


# ----------------------------------------------------------------------------
# Deterministic parameter init (synthetic)
# ----------------------------------------------------------------------------
def init_params(key, C, num_heads, ws):
    ks = jax.random.split(key, 20)

    def w(k, shape, s=0.05):
        return jax.random.normal(k, shape, jnp.float32) * s

    def bn(k1, k2, k3, k4):
        gamma = 1.0 + 0.1 * jax.random.normal(k1, (C,), jnp.float32)
        beta = 0.05 * jax.random.normal(k2, (C,), jnp.float32)
        mean = 0.05 * jax.random.normal(k3, (C,), jnp.float32)
        var = 1.0 + 0.1 * jnp.abs(jax.random.normal(k4, (C,), jnp.float32))
        return (gamma, beta, mean, var)

    table = jax.random.truncated_normal(
        ks[16], -2.0, 2.0, ((2 * ws - 1) * (2 * ws - 1), num_heads),
        jnp.float32) * 0.02

    return {
        'qkv_w': w(ks[0], (3 * C, C)),
        'local1_w': w(ks[1], (C, C, 3, 3)),
        'local1_bn': bn(ks[2], ks[3], ks[4], ks[5]),
        'local2_w': w(ks[6], (C, C)),
        'local2_bn': bn(ks[7], ks[8], ks[9], ks[10]),
        'proj_dw_w': w(ks[11], (C, 1, ws, ws)),
        'proj_bn': bn(ks[12], ks[13], ks[14], ks[15]),
        'proj_pw_w': w(ks[17], (C, C)),
        'rel_pos_table': table,
        'rel_pos_index': jnp.asarray(_relative_position_index(ws), jnp.int32),
    }


if __name__ == "__main__":
    B, C, H, W = 2, 32, 16, 16
    num_heads, ws = 4, 8

    key = jax.random.PRNGKey(0)
    kx, kp = jax.random.split(key)
    x = jax.random.normal(kx, (B, C, H, W), jnp.float32)
    params = init_params(kp, C, num_heads, ws)

    fwd = jax.jit(functools.partial(global_local_attention_forward,
                                    num_heads=num_heads, window_size=ws))
    out = jax.block_until_ready(fwd(x, params))
    assert out.shape == (B, C, H, W), out.shape
    assert bool(jnp.all(jnp.isfinite(out)))
    print("KERNEL_OK")
</pallas_src>

<mosaic_0001>
module attributes {stable_mosaic.version = 11 : i64} {
  func.func @_matmul_bias_kernel(%arg0: i32, %arg1: i32, %arg2: i32, %arg3: memref<256x32xbf16, #tpu.memory_space<vmem>>, %arg4: memref<32x128xbf16, #tpu.memory_space<vmem>>, %arg5: memref<1x128xf32, #tpu.memory_space<vmem>>, %arg6: memref<256x128xbf16, #tpu.memory_space<vmem>>, %arg7: memref<256x128xf32, #tpu.memory_space<vmem>>) attributes {dimension_semantics = [#tpu.dimension_semantics<parallel>, #tpu.dimension_semantics<parallel>, #tpu.dimension_semantics<arbitrary>], iteration_bounds = array<i64: 2, 1, 1>, scalar_prefetch = 0 : i64, scratch_operands = 1 : i64, tpu.core_type = #tpu.core_type<tc>, window_params = [{transform_indices = @transform_0, window_bounds = array<i64: 256, 32>}, {transform_indices = @transform_1, window_bounds = array<i64: 32, 128>}, {transform_indices = @transform_2, window_bounds = array<i64: 1, 128>}, {transform_indices = @transform_3, window_bounds = array<i64: 256, 128>}]} {
    %c0_i32 = arith.constant 0 : i32
    %0 = arith.cmpi eq, %arg2, %c0_i32 : i32
    %1 = arith.extui %0 : i1 to i32
    %c0_i32_0 = arith.constant 0 : i32
    %2 = arith.cmpi ne, %1, %c0_i32_0 : i32
    scf.if %2 {
      %cst_10 = arith.constant 0.000000e+00 : f32
      %12 = vector.broadcast %cst_10 : f32 to vector<256x128xf32>
      %c0_11 = arith.constant 0 : index
      %c0_12 = arith.constant 0 : index
      %13 = vector.load %arg7[%c0_11, %c0_12] : memref<256x128xf32, #tpu.memory_space<vmem>>, vector<256x128xf32>
      tpu.vector_store %arg7[%c0_11, %c0_12], %12 {strides = array<i32>} : memref<256x128xf32, #tpu.memory_space<vmem>>, vector<256x128xf32>,
    } else {
    }
    %c0 = arith.constant 0 : index
    %c0_1 = arith.constant 0 : index
    %3 = vector.load %arg7[%c0, %c0_1] : memref<256x128xf32, #tpu.memory_space<vmem>>, vector<256x128xf32>
    %c0_2 = arith.constant 0 : index
    %c0_3 = arith.constant 0 : index
    %4 = vector.load %arg3[%c0_2, %c0_3] : memref<256x32xbf16, #tpu.memory_space<vmem>>, vector<256x32xbf16>
    %c0_4 = arith.constant 0 : index
    %c0_5 = arith.constant 0 : index
    %5 = vector.load %arg4[%c0_4, %c0_5] : memref<32x128xbf16, #tpu.memory_space<vmem>>, vector<32x128xbf16>
    %cst = arith.constant dense<0.000000e+00> : vector<256x128xf32>
    %6 = tpu.matmul %4, %5, %cst {dimension_numbers = #tpu.dot_dimension_numbers<[1], [0], [0], [1], [0, 0, 1, 1], [], []>} : vector<256x32xbf16>, vector<32x128xbf16>, vector<256x128xf32> -> vector<256x128xf32>
    %7 = arith.addf %3, %6 : vector<256x128xf32>
    %c0_6 = arith.constant 0 : index
    %c0_7 = arith.constant 0 : index
    %8 = vector.load %arg7[%c0_6, %c0_7] : memref<256x128xf32, #tpu.memory_space<vmem>>, vector<256x128xf32>
    tpu.vector_store %arg7[%c0_6, %c0_7], %7 {strides = array<i32>} : memref<256x128xf32, #tpu.memory_space<vmem>>, vector<256x128xf32>,
    %c0_i32_8 = arith.constant 0 : i32
    %9 = arith.cmpi eq, %arg2, %c0_i32_8 : i32
    %10 = arith.extui %9 : i1 to i32
    %c0_i32_9 = arith.constant 0 : i32
    %11 = arith.cmpi ne, %10, %c0_i32_9 : i32
    scf.if %11 {
      %c0_10 = arith.constant 0 : index
      %c0_11 = arith.constant 0 : index
      %12 = vector.load %arg7[%c0_10, %c0_11] : memref<256x128xf32, #tpu.memory_space<vmem>>, vector<256x128xf32>
      %c0_12 = arith.constant 0 : index
      %c0_13 = arith.constant 0 : index
      %13 = vector.load %arg5[%c0_12, %c0_13] : memref<1x128xf32, #tpu.memory_space<vmem>>, vector<1x128xf32>
      %14 = vector.broadcast %13 : vector<1x128xf32> to vector<256x128xf32>
      %15 = arith.addf %12, %14 : vector<256x128xf32>
      %16 = arith.truncf %15 : vector<256x128xf32> to vector<256x128xbf16>
      %c0_14 = arith.constant 0 : index
      %c0_15 = arith.constant 0 : index
      %17 = vector.load %arg6[%c0_14, %c0_15] : memref<256x128xbf16, #tpu.memory_space<vmem>>, vector<256x128xbf16>
      tpu.vector_store %arg6[%c0_14, %c0_15], %16 {strides = array<i32>} : memref<256x128xbf16, #tpu.memory_space<vmem>>, vector<256x128xbf16>,
    } else {
    }
    return
  }
  func.func @transform_0(%arg0: i32, %arg1: i32, %arg2: i32) -> (i32, i32) {
    %c0_i32 = arith.constant 0 : i32
    return %arg0, %arg2 : i32, i32
  }
  func.func @transform_1(%arg0: i32, %arg1: i32, %arg2: i32) -> (i32, i32) {
    %c0_i32 = arith.constant 0 : i32
    return %arg2, %arg1 : i32, i32
  }
  func.func @transform_2(%arg0: i32, %arg1: i32, %arg2: i32) -> (i32, i32) {
    %c0_i32 = arith.constant 0 : i32
    %c0_i32_0 = arith.constant 0 : i32
    return %c0_i32, %arg1 : i32, i32
  }
  func.func @transform_3(%arg0: i32, %arg1: i32, %arg2: i32) -> (i32, i32) {
    %c0_i32 = arith.constant 0 : i32
    return %arg0, %arg1 : i32, i32
  }
}

module attributes {stable_mosaic.version = 11 : i64} {
  func.func @_window_attn_kernel(%arg0: i32, %arg1: i32, %arg2: i32, %arg3: memref<1x8x8x128xbf16, #tpu.memory_space<vmem>>, %arg4: memref<4x64x64xf32, #tpu.memory_space<vmem>>, %arg5: memref<1x8x8x32xf32, #tpu.memory_space<vmem>>) attributes {dimension_semantics = [#tpu.dimension_semantics<parallel>, #tpu.dimension_semantics<parallel>, #tpu.dimension_semantics<parallel>], iteration_bounds = array<i64: 2, 2, 2>, scalar_prefetch = 0 : i64, scratch_operands = 0 : i64, tpu.core_type = #tpu.core_type<tc>, window_params = [{transform_indices = @transform_0, window_bounds = array<i64: 1, 8, 8, 128>}, {pipeline_mode = #tpu.pipeline_mode<synchronous>, transform_indices = @transform_1, window_bounds = array<i64: 4, 64, 64>}, {transform_indices = @transform_2, window_bounds = array<i64: 1, 8, 8, 32>}]} {
    %c0 = arith.constant 0 : index
    %c0_0 = arith.constant 0 : index
    %c0_1 = arith.constant 0 : index
    %c0_2 = arith.constant 0 : index
    %0 = vector.load %arg3[%c0, %c0_0, %c0_1, %c0_2] : memref<1x8x8x128xbf16, #tpu.memory_space<vmem>>, vector<1x8x8x128xbf16>
    %1 = vector.shape_cast %0 : vector<1x8x8x128xbf16> to vector<64x128xbf16>
    %2 = vector.extract_strided_slice %1 {offsets = [0, 0], sizes = [64, 32], strides = [1, 1]} : vector<64x128xbf16> to vector<64x32xbf16>
    %3 = vector.extract_strided_slice %1 {offsets = [0, 32], sizes = [64, 32], strides = [1, 1]} : vector<64x128xbf16> to vector<64x32xbf16>
    %4 = vector.extract_strided_slice %1 {offsets = [0, 64], sizes = [64, 32], strides = [1, 1]} : vector<64x128xbf16> to vector<64x32xbf16>
    %5 = vector.extract_strided_slice %2 {offsets = [0, 0], sizes = [64, 8], strides = [1, 1]} : vector<64x32xbf16> to vector<64x8xbf16>
    %6 = vector.extract_strided_slice %3 {offsets = [0, 0], sizes = [64, 8], strides = [1, 1]} : vector<64x32xbf16> to vector<64x8xbf16>
    %cst = arith.constant dense<0.000000e+00> : vector<64x64xf32>
    %7 = tpu.matmul %5, %6, %cst {dimension_numbers = #tpu.dot_dimension_numbers<[1], [1], [0], [0], [0, 0, 1, 0], [], []>} : vector<64x8xbf16>, vector<64x8xbf16>, vector<64x64xf32> -> vector<64x64xf32>
    %c0_3 = arith.constant 0 : index
    %c0_4 = arith.constant 0 : index
    %c0_5 = arith.constant 0 : index
    %8 = vector.load %arg4[%c0_3, %c0_4, %c0_5] : memref<4x64x64xf32, #tpu.memory_space<vmem>>, vector<1x64x64xf32>
    %9 = vector.shape_cast %8 : vector<1x64x64xf32> to vector<64x64xf32>
    %10 = arith.addf %7, %9 : vector<64x64xf32>
    %cst_6 = arith.constant dense<0xFF800000> : vector<64xf32>
    %11 = vector.multi_reduction <maximumf>, %10, %cst_6 [1] : vector<64x64xf32> to vector<64xf32>
    %12 = vector.shape_cast %11 : vector<64xf32> to vector<64x1xf32>
    %13 = vector.broadcast %12 : vector<64x1xf32> to vector<64x64xf32>
    %14 = arith.subf %10, %13 : vector<64x64xf32>
    %15 = math.exp %14 : vector<64x64xf32>
    %cst_7 = arith.constant dense<0.000000e+00> : vector<64xf32>
    %16 = vector.multi_reduction <add>, %15, %cst_7 [1] : vector<64x64xf32> to vector<64xf32>
    %17 = vector.shape_cast %16 : vector<64xf32> to vector<64x1xf32>
    %18 = tpu.reciprocal %17 {approx = true} : vector<64x1xf32> -> vector<64x1xf32>
    %19 = vector.broadcast %18 : vector<64x1xf32> to vector<64x64xf32>
    %20 = arith.mulf %15, %19 : vector<64x64xf32>
    %21 = arith.truncf %20 : vector<64x64xf32> to vector<64x64xbf16>
    %22 = vector.extract_strided_slice %4 {offsets = [0, 0], sizes = [64, 8], strides = [1, 1]} : vector<64x32xbf16> to vector<64x8xbf16>
    %cst_8 = arith.constant dense<0.000000e+00> : vector<64x8xf32>
    %23 = tpu.matmul %21, %22, %cst_8 {dimension_numbers = #tpu.dot_dimension_numbers<[1], [0], [0], [1], [0, 0, 1, 1], [], []>} : vector<64x64xbf16>, vector<64x8xbf16>, vector<64x8xf32> -> vector<64x8xf32>
    %24 = vector.extract_strided_slice %2 {offsets = [0, 8], sizes = [64, 8], strides = [1, 1]} : vector<64x32xbf16> to vector<64x8xbf16>
    %25 = vector.extract_strided_slice %3 {offsets = [0, 8], sizes = [64, 8], strides = [1, 1]} : vector<64x32xbf16> to vector<64x8xbf16>
    %cst_9 = arith.constant dense<0.000000e+00> : vector<64x64xf32>
    %26 = tpu.matmul %24, %25, %cst_9 {dimension_numbers = #tpu.dot_dimension_numbers<[1], [1], [0], [0], [0, 0, 1, 0], [], []>} : vector<64x8xbf16>, vector<64x8xbf16>, vector<64x64xf32> -> vector<64x64xf32>
    %c1 = arith.constant 1 : index
    %c0_10 = arith.constant 0 : index
    %c0_11 = arith.constant 0 : index
    %27 = vector.load %arg4[%c1, %c0_10, %c0_11] : memref<4x64x64xf32, #tpu.memory_space<vmem>>, vector<1x64x64xf32>
    %28 = vector.shape_cast %27 : vector<1x64x64xf32> to vector<64x64xf32>
    %29 = arith.addf %26, %28 : vector<64x64xf32>
    %cst_12 = arith.constant dense<0xFF800000> : vector<64xf32>
    %30 = vector.multi_reduction <maximumf>, %29, %cst_12 [1] : vector<64x64xf32> to vector<64xf32>
    %31 = vector.shape_cast %30 : vector<64xf32> to vector<64x1xf32>
    %32 = vector.broadcast %31 : vector<64x1xf32> to vector<64x64xf32>
    %33 = arith.subf %29, %32 : vector<64x64xf32>
    %34 = math.exp %33 : vector<64x64xf32>
    %cst_13 = arith.constant dense<0.000000e+00> : vector<64xf32>
    %35 = vector.multi_reduction <add>, %34, %cst_13 [1] : vector<64x64xf32> to vector<64xf32>
    %36 = vector.shape_cast %35 : vector<64xf32> to vector<64x1xf32>
    %37 = tpu.reciprocal %36 {approx = true} : vector<64x1xf32> -> vector<64x1xf32>
    %38 = vector.broadcast %37 : vector<64x1xf32> to vector<64x64xf32>
    %39 = arith.mulf %34, %38 : vector<64x64xf32>
    %40 = arith.truncf %39 : vector<64x64xf32> to vector<64x64xbf16>
    %41 = vector.extract_strided_slice %4 {offsets = [0, 8], sizes = [64, 8], strides = [1, 1]} : vector<64x32xbf16> to vector<64x8xbf16>
    %cst_14 = arith.constant dense<0.000000e+00> : vector<64x8xf32>
    %42 = tpu.matmul %40, %41, %cst_14 {dimension_numbers = #tpu.dot_dimension_numbers<[1], [0], [0], [1], [0, 0, 1, 1], [], []>} : vector<64x64xbf16>, vector<64x8xbf16>, vector<64x8xf32> -> vector<64x8xf32>
    %43 = vector.extract_strided_slice %2 {offsets = [0, 16], sizes = [64, 8], strides = [1, 1]} : vector<64x32xbf16> to vector<64x8xbf16>
    %44 = vector.extract_strided_slice %3 {offsets = [0, 16], sizes = [64, 8], strides = [1, 1]} : vector<64x32xbf16> to vector<64x8xbf16>
    %cst_15 = arith.constant dense<0.000000e+00> : vector<64x64xf32>
    %45 = tpu.matmul %43, %44, %cst_15 {dimension_numbers = #tpu.dot_dimension_numbers<[1], [1], [0], [0], [0, 0, 1, 0], [], []>} : vector<64x8xbf16>, vector<64x8xbf16>, vector<64x64xf32> -> vector<64x64xf32>
    %c2 = arith.constant 2 : index
    %c0_16 = arith.constant 0 : index
    %c0_17 = arith.constant 0 : index
    %46 = vector.load %arg4[%c2, %c0_16, %c0_17] : memref<4x64x64xf32, #tpu.memory_space<vmem>>, vector<1x64x64xf32>
    %47 = vector.shape_cast %46 : vector<1x64x64xf32> to vector<64x64xf32>
    %48 = arith.addf %45, %47 : vector<64x64xf32>
    %cst_18 = arith.constant dense<0xFF800000> : vector<64xf32>
    %49 = vector.multi_reduction <maximumf>, %48, %cst_18 [1] : vector<64x64xf32> to vector<64xf32>
    %50 = vector.shape_cast %49 : vector<64xf32> to vector<64x1xf32>
    %51 = vector.broadcast %50 : vector<64x1xf32> to vector<64x64xf32>
    %52 = arith.subf %48, %51 : vector<64x64xf32>
    %53 = math.exp %52 : vector<64x64xf32>
    %cst_19 = arith.constant dense<0.000000e+00> : vector<64xf32>
    %54 = vector.multi_reduction <add>, %53, %cst_19 [1] : vector<64x64xf32> to vector<64xf32>
    %55 = vector.shape_cast %54 : vector<64xf32> to vector<64x1xf32>
    %56 = tpu.reciprocal %55 {approx = true} : vector<64x1xf32> -> vector<64x1xf32>
    %57 = vector.broadcast %56 : vector<64x1xf32> to vector<64x64xf32>
    %58 = arith.mulf %53, %57 : vector<64x64xf32>
    %59 = arith.truncf %58 : vector<64x64xf32> to vector<64x64xbf16>
    %60 = vector.extract_strided_slice %4 {offsets = [0, 16], sizes = [64, 8], strides = [1, 1]} : vector<64x32xbf16> to vector<64x8xbf16>
    %cst_20 = arith.constant dense<0.000000e+00> : vector<64x8xf32>
    %61 = tpu.matmul %59, %60, %cst_20 {dimension_numbers = #tpu.dot_dimension_numbers<[1], [0], [0], [1], [0, 0, 1, 1], [], []>} : vector<64x64xbf16>, vector<64x8xbf16>, vector<64x8xf32> -> vector<64x8xf32>
    %62 = vector.extract_strided_slice %2 {offsets = [0, 24], sizes = [64, 8], strides = [1, 1]} : vector<64x32xbf16> to vector<64x8xbf16>
    %63 = vector.extract_strided_slice %3 {offsets = [0, 24], sizes = [64, 8], strides = [1, 1]} : vector<64x32xbf16> to vector<64x8xbf16>
    %cst_21 = arith.constant dense<0.000000e+00> : vector<64x64xf32>
    %64 = tpu.matmul %62, %63, %cst_21 {dimension_numbers = #tpu.dot_dimension_numbers<[1], [1], [0], [0], [0, 0, 1, 0], [], []>} : vector<64x8xbf16>, vector<64x8xbf16>, vector<64x64xf32> -> vector<64x64xf32>
    %c3 = arith.constant 3 : index
    %c0_22 = arith.constant 0 : index
    %c0_23 = arith.constant 0 : index
    %65 = vector.load %arg4[%c3, %c0_22, %c0_23] : memref<4x64x64xf32, #tpu.memory_space<vmem>>, vector<1x64x64xf32>
    %66 = vector.shape_cast %65 : vector<1x64x64xf32> to vector<64x64xf32>
    %67 = arith.addf %64, %66 : vector<64x64xf32>
    %cst_24 = arith.constant dense<0xFF800000> : vector<64xf32>
    %68 = vector.multi_reduction <maximumf>, %67, %cst_24 [1] : vector<64x64xf32> to vector<64xf32>
    %69 = vector.shape_cast %68 : vector<64xf32> to vector<64x1xf32>
    %70 = vector.broadcast %69 : vector<64x1xf32> to vector<64x64xf32>
    %71 = arith.subf %67, %70 : vector<64x64xf32>
    %72 = math.exp %71 : vector<64x64xf32>
    %cst_25 = arith.constant dense<0.000000e+00> : vector<64xf32>
    %73 = vector.multi_reduction <add>, %72, %cst_25 [1] : vector<64x64xf32> to vector<64xf32>
    %74 = vector.shape_cast %73 : vector<64xf32> to vector<64x1xf32>
    %75 = tpu.reciprocal %74 {approx = true} : vector<64x1xf32> -> vector<64x1xf32>
    %76 = vector.broadcast %75 : vector<64x1xf32> to vector<64x64xf32>
    %77 = arith.mulf %72, %76 : vector<64x64xf32>
    %78 = arith.truncf %77 : vector<64x64xf32> to vector<64x64xbf16>
    %79 = vector.extract_strided_slice %4 {offsets = [0, 24], sizes = [64, 8], strides = [1, 1]} : vector<64x32xbf16> to vector<64x8xbf16>
    %cst_26 = arith.constant dense<0.000000e+00> : vector<64x8xf32>
    %80 = tpu.matmul %78, %79, %cst_26 {dimension_numbers = #tpu.dot_dimension_numbers<[1], [0], [0], [1], [0, 0, 1, 1], [], []>} : vector<64x64xbf16>, vector<64x8xbf16>, vector<64x8xf32> -> vector<64x8xf32>
    %81 = tpu.concatenate %23, %42, %61, %80 in 1 : vector<64x8xf32>, vector<64x8xf32>, vector<64x8xf32>, vector<64x8xf32> -> vector<64x32xf32>
    %82 = vector.shape_cast %81 : vector<64x32xf32> to vector<1x8x8x32xf32>
    %c0_27 = arith.constant 0 : index
    %c0_28 = arith.constant 0 : index
    %c0_29 = arith.constant 0 : index
    %c0_30 = arith.constant 0 : index
    %83 = vector.load %arg5[%c0_27, %c0_28, %c0_29, %c0_30] : memref<1x8x8x32xf32, #tpu.memory_space<vmem>>, vector<1x8x8x32xf32>
    tpu.vector_store %arg5[%c0_27, %c0_28, %c0_29, %c0_30], %82 {strides = array<i32>} : memref<1x8x8x32xf32, #tpu.memory_space<vmem>>, vector<1x8x8x32xf32>,
    return
  }
  func.func @transform_0(%arg0: i32, %arg1: i32, %arg2: i32) -> (i32, i32, i32, i32) {
    %c0_i32 = arith.constant 0 : i32
    %c0_i32_0 = arith.constant 0 : i32
    return %arg0, %arg1, %arg2, %c0_i32 : i32, i32, i32, i32
  }
  func.func @transform_1(%arg0: i32, %arg1: i32, %arg2: i32) -> (i32, i32, i32) {
    %c0_i32 = arith.constant 0 : i32
    %c0_i32_0 = arith.constant 0 : i32
    %c0_i32_1 = arith.constant 0 : i32
    %c0_i32_2 = arith.constant 0 : i32
    return %c0_i32, %c0_i32_0, %c0_i32_1 : i32, i32, i32
  }
  func.func @transform_2(%arg0: i32, %arg1: i32, %arg2: i32) -> (i32, i32, i32, i32) {
    %c0_i32 = arith.constant 0 : i32
    %c0_i32_0 = arith.constant 0 : i32
    return %arg0, %arg1, %arg2, %c0_i32 : i32, i32, i32, i32
  }
}

module attributes {stable_mosaic.version = 11 : i64} {
  func.func @_matmul_bias_kernel(%arg0: i32, %arg1: i32, %arg2: i32, %arg3: memref<256x32xbf16, #tpu.memory_space<vmem>>, %arg4: memref<32x32xbf16, #tpu.memory_space<vmem>>, %arg5: memref<1x32xf32, #tpu.memory_space<vmem>>, %arg6: memref<256x32xf32, #tpu.memory_space<vmem>>, %arg7: memref<256x32xf32, #tpu.memory_space<vmem>>) attributes {dimension_semantics = [#tpu.dimension_semantics<parallel>, #tpu.dimension_semantics<parallel>, #tpu.dimension_semantics<arbitrary>], iteration_bounds = array<i64: 2, 1, 1>, scalar_prefetch = 0 : i64, scratch_operands = 1 : i64, tpu.core_type = #tpu.core_type<tc>, window_params = [{transform_indices = @transform_0, window_bounds = array<i64: 256, 32>}, {transform_indices = @transform_1, window_bounds = array<i64: 32, 32>}, {transform_indices = @transform_2, window_bounds = array<i64: 1, 32>}, {transform_indices = @transform_3, window_bounds = array<i64: 256, 32>}]} {
    %c0_i32 = arith.constant 0 : i32
    %0 = arith.cmpi eq, %arg2, %c0_i32 : i32
    %1 = arith.extui %0 : i1 to i32
    %c0_i32_0 = arith.constant 0 : i32
    %2 = arith.cmpi ne, %1, %c0_i32_0 : i32
    scf.if %2 {
      %cst_10 = arith.constant 0.000000e+00 : f32
      %12 = vector.broadcast %cst_10 : f32 to vector<256x32xf32>
      %c0_11 = arith.constant 0 : index
      %c0_12 = arith.constant 0 : index
      %13 = vector.load %arg7[%c0_11, %c0_12] : memref<256x32xf32, #tpu.memory_space<vmem>>, vector<256x32xf32>
      tpu.vector_store %arg7[%c0_11, %c0_12], %12 {strides = array<i32>} : memref<256x32xf32, #tpu.memory_space<vmem>>, vector<256x32xf32>,
    } else {
    }
    %c0 = arith.constant 0 : index
    %c0_1 = arith.constant 0 : index
    %3 = vector.load %arg7[%c0, %c0_1] : memref<256x32xf32, #tpu.memory_space<vmem>>, vector<256x32xf32>
    %c0_2 = arith.constant 0 : index
    %c0_3 = arith.constant 0 : index
    %4 = vector.load %arg3[%c0_2, %c0_3] : memref<256x32xbf16, #tpu.memory_space<vmem>>, vector<256x32xbf16>
    %c0_4 = arith.constant 0 : index
    %c0_5 = arith.constant 0 : index
    %5 = vector.load %arg4[%c0_4, %c0_5] : memref<32x32xbf16, #tpu.memory_space<vmem>>, vector<32x32xbf16>
    %cst = arith.constant dense<0.000000e+00> : vector<256x32xf32>
    %6 = tpu.matmul %4, %5, %cst {dimension_numbers = #tpu.dot_dimension_numbers<[1], [0], [0], [1], [0, 0, 1, 1], [], []>} : vector<256x32xbf16>, vector<32x32xbf16>, vector<256x32xf32> -> vector<256x32xf32>
    %7 = arith.addf %3, %6 : vector<256x32xf32>
    %c0_6 = arith.constant 0 : index
    %c0_7 = arith.constant 0 : index
    %8 = vector.load %arg7[%c0_6, %c0_7] : memref<256x32xf32, #tpu.memory_space<vmem>>, vector<256x32xf32>
    tpu.vector_store %arg7[%c0_6, %c0_7], %7 {strides = array<i32>} : memref<256x32xf32, #tpu.memory_space<vmem>>, vector<256x32xf32>,
    %c0_i32_8 = arith.constant 0 : i32
    %9 = arith.cmpi eq, %arg2, %c0_i32_8 : i32
    %10 = arith.extui %9 : i1 to i32
    %c0_i32_9 = arith.constant 0 : i32
    %11 = arith.cmpi ne, %10, %c0_i32_9 : i32
    scf.if %11 {
      %c0_10 = arith.constant 0 : index
      %c0_11 = arith.constant 0 : index
      %12 = vector.load %arg7[%c0_10, %c0_11] : memref<256x32xf32, #tpu.memory_space<vmem>>, vector<256x32xf32>
      %c0_12 = arith.constant 0 : index
      %c0_13 = arith.constant 0 : index
      %13 = vector.load %arg5[%c0_12, %c0_13] : memref<1x32xf32, #tpu.memory_space<vmem>>, vector<1x32xf32>
      %14 = vector.broadcast %13 : vector<1x32xf32> to vector<256x32xf32>
      %15 = arith.addf %12, %14 : vector<256x32xf32>
      %c0_14 = arith.constant 0 : index
      %c0_15 = arith.constant 0 : index
      %16 = vector.load %arg6[%c0_14, %c0_15] : memref<256x32xf32, #tpu.memory_space<vmem>>, vector<256x32xf32>
      tpu.vector_store %arg6[%c0_14, %c0_15], %15 {strides = array<i32>} : memref<256x32xf32, #tpu.memory_space<vmem>>, vector<256x32xf32>,
    } else {
    }
    return
  }
  func.func @transform_0(%arg0: i32, %arg1: i32, %arg2: i32) -> (i32, i32) {
    %c0_i32 = arith.constant 0 : i32
    return %arg0, %arg2 : i32, i32
  }
  func.func @transform_1(%arg0: i32, %arg1: i32, %arg2: i32) -> (i32, i32) {
    %c0_i32 = arith.constant 0 : i32
    return %arg2, %arg1 : i32, i32
  }
  func.func @transform_2(%arg0: i32, %arg1: i32, %arg2: i32) -> (i32, i32) {
    %c0_i32 = arith.constant 0 : i32
    %c0_i32_0 = arith.constant 0 : i32
    return %c0_i32, %arg1 : i32, i32
  }
  func.func @transform_3(%arg0: i32, %arg1: i32, %arg2: i32) -> (i32, i32) {
    %c0_i32 = arith.constant 0 : i32
    return %arg0, %arg1 : i32, i32
  }
}

</mosaic_0001>

<bundles_post_ra>
// kernel: global_local_attention_forward.4
= control target key start
LH: loop header
LB: loop body
LE: loop exit
PB: predicated region body
PF: predicated region fallthrough
CT: control target
= control target key end

     0   :  { %s2342_s9 = smov 0   ;;  %s2344_s10 = smov 0   ;;  %s3004_s0 = inlined_call_operand.vmem [shape: bf16[2,16,16,128], index: 0, kind: input, shape index: {}]   ;;  %s3005_s1 = inlined_call_operand.vmem [shape: f32[4,64,64], index: 1, kind: input, shape index: {}]   ;;  %s3006_s2 = inlined_call_operand.vmem [shape: f32[2,16,16,32], index: 2, kind: output, shape index: {}]  }
   0x1   :  { %s2346_s11 = smov 0   ;;  %s2348_s12 = smov 0  }
   0x2   :  { %s2350_s13 = smov 0   ;;  %s2352_s14 = smov 0  }
   0x3   :  { %s2354_s15 = smov 0   ;;  %s2356_s16 = smov 0  }
   0x4   :  { %s2358_s17 = smov 0  }
   0x5 LB: > { %s24_s18 = sadd.s32 1, %s2299_s14  ;;  %s27_s19 = sadd.s32 1, %s2303_s15  ;;  %s2311_s17 = sphi %s2358_s17, %s12_s17   ;;  %s2307_s16 = sphi %s2356_s16, %s3016_s16   ;;  %s2303_s15 = sphi %s2354_s15, %s3015_s15   ;;  %s2299_s14 = sphi %s2352_s14, %s3014_s14   ;;  %s2295_s13 = sphi %s2350_s13, %s3013_s13   ;;  %s2291_s12 = sphi %s2348_s12, %s3012_s12   ;;  %s2287_s11 = sphi %s2346_s11, %s3011_s11   ;;  %s2283_s10 = sphi %s2344_s10, %s3010_s10   ;;  %s2279_s9 = sphi %s2342_s9, %s3009_s9  }
   0x6   : > { %p25_p0 = scmp.ge.s32.totalorder %s24_s18, 2  ;;  %s1730_s20 = sadd.s32 4294967295, %s2311_s17  }
   0x7   : > { %s31_s21 = sadd.s32 1, %s2307_s16  ;;  %p49_p1 = scmp.ne.s32.totalorder %s2283_s10, %s2279_s9 }
   0x8   : > { %s3018_s18 = smov (%p25_p0, %s24_s18), 0  ;;  %s3020_s19 = smov (!%p25_p0, %s27_s19), %s2303_s15 }
   0x9   : > { %p29_p2 = scmp.ge.s32.totalorder %s3020_s19, 2  ;;  %p50_p3 = scmp.eq.s32.totalorder %s2311_s17, 0 }
   0xa   : > { %p104_p4 = scmp.eq.s32.totalorder %s1730_s20, 7  ;;  %s38_s25 = ssub.s32 %s2299_s14, %s3018_s18 }
   0xb   : > { %s3022_s19 = smov (%p29_p2, %s3020_s19), 0  ;;  %s3024_s21 = smov (!%p29_p2, %s31_s21), %s2307_s16 }
   0xc   : > { %p2400_p5 = por %p50_p3, %p49_p1  ;;  %p33_p6 = scmp.ge.s32.totalorder %s3024_s21, 2 }
   0xd   : > { %p2404_p7 = por %p104_p4, %p49_p1  ;;  %s36_s24 = ssub.s32 %s2303_s15, %s3022_s19 }
   0xe   : > { %s3026_s21 = smov (%p33_p6, %s3024_s21), 0  ;;  %s42_s29 = sadd.s32 1, %s2283_s10 }
   0xf   : > { %s35_s26 = ssub.s32 %s2307_s16, %s3026_s21  ;;  %p1733_p9 = scmp.ge.s32.totalorder %s2311_s17, 8 }
  0x10   : > { %s37_s27 = sor.u32 %s36_s24, %s35_s26 }
  0x11   : > { %s39_s28 = sor.u32 %s38_s25, %s37_s27  ;;  %129 = sbr.rel (%p1733_p9) target bundleno = 36 (0x24), region = 20 }
  0x12   : > { %p40_p8 = scmp.eq.s32.totalorder %s39_s28, 0 }
  0x14   : > { %s2418_s30 = scalar_select %p40_p8, %s2283_s10, %s42_s29  }
  0x18   : > { %132 = sbr.rel (!%p2400_p5) target bundleno = 36 (0x24), region = 24  ;;  %s134_s3 = sand.u32 (%p2400_p5), 1, %s2283_s10  }
  0x19   : > { %s1809_s4 = sshll.u32 (%p2400_p5), %s2303_s15, 4  ;;  %s1734_s5 = sshll.u32 (%p2400_p5), %s134_s3, 5 }
  0x1a   : > { %s139_s6 = sadd.s32 (%p2400_p5), %s2299_s14, %s1809_s4  ;;  %s1737_s7 = sshll.u32 (%p2400_p5), %s2307_s16, 5 }
  0x1b   : > { %s141_s8 = sadd.s32 (%p2400_p5), %s1737_s7, %s139_s6  ;;  %s136_s22 = scalar_lea.vmem (%p2400_p5), [#allocation2], %s1734_s5 }
  0x1c   : > { %s1738_s20 = sshll.u32 (%p2400_p5), %s141_s8, 2 }
  0x1d   : > { %s143_s26 = scalar_lea.vmem (%p2400_p5), %s3004_s0, %s1738_s20 }
  0x1e   : > { %v159_v0 = vld [vmem:[%s143_s26] sm:$0xf] (%p2400_p5)  ;;  %v161_v1 = vld [vmem:[%s143_s26 + $0x8] sm:$0xf] (%p2400_p5)  ;;  %v163_v2 = vld [vmem:[%s143_s26 + $0x10] sm:$0xf] (%p2400_p5) }
  0x1f   : > { %160 = vst [vmem:[%s136_s22] sm:$0xf] %v159_v0  ;;  %162 = vst [vmem:[%s136_s22 + $0x4] sm:$0xf] %v161_v1  ;;  %v165_v3 = vld [vmem:[%s143_s26 + $0x18] sm:$0xf] }
  0x20   : > { %164 = vst [vmem:[%s136_s22 + $0x8] sm:$0xf] %v163_v2  ;;  %v167_v4 = vld [vmem:[%s143_s26 + $0x20] sm:$0xf]  ;;  %v169_v5 = vld [vmem:[%s143_s26 + $0x28] sm:$0xf] }
  0x21   : > { %166 = vst [vmem:[%s136_s22 + $0xc] sm:$0xf] %v165_v3  ;;  %168 = vst [vmem:[%s136_s22 + $0x10] sm:$0xf] %v167_v4  ;;  %v171_v6 = vld [vmem:[%s143_s26 + $0x30] sm:$0xf] }
  0x22   : > { %170 = vst [vmem:[%s136_s22 + $0x14] sm:$0xf] %v169_v5  ;;  %v173_v7 = vld [vmem:[%s143_s26 + $0x38] sm:$0xf]  ;;  %172 = vst [vmem:[%s136_s22 + $0x18] sm:$0xf] %v171_v6 }
  0x23   : > { %174 = vst [vmem:[%s136_s22 + $0x1c] sm:$0xf] %v173_v7 }
  0x24 PF: > { %p1739_p10 = scmp.ge.s32.totalorder %s2311_s17, 1  ;;  %p212_p11 = scmp.lt.s32.totalorder %s2311_s17, 9 }
  0x26   : > { %p213_p12 = pnand %p1739_p10, %p212_p11 }
  0x27   : > { %s219_s27 = sand.u32 (!%p213_p12), 1, %s2279_s9   ;;  %vm286_vm0 = vcmask (!%p213_p12), 64512   ;;  %s2313_s3 = smov (!%p213_p12), 96   ;;  %v252_v20 = vld [vmem:[%s3005_s1 + $0x10] sm:$0xff] (!%p213_p12)  ;;  %v250_v22 = vld [vmem:[%s3005_s1] sm:$0xff] (!%p213_p12)  ;;  %vm376_vm1 = vcmask (!%p213_p12), 523264  }
  0x28   : > { %216 = sbr.rel (%p213_p12) target bundleno = 2882 (0xb42), region = 65  ;;  %s1740_s28 = sshll.u32 (!%p213_p12), %s219_s27, 5  ;;  %v251_v25 = vld [vmem:[%s3005_s1 + $0x8] sm:$0xff] (!%p213_p12)  ;;  %v253_v30 = vld [vmem:[%s3005_s1 + $0x18] sm:$0xff] (!%p213_p12)  ;;  %v256_v33 = vld [vmem:[%s3005_s1 + $0x30] sm:$0xff] (!%p213_p12)  ;;  %vm1556_vm2 = vcmask (!%p213_p12), 195584  }
  0x29   : > { %s2435_s29 = scalar_lea.vmem (!%p213_p12), [#allocation2], %s1740_s28  ;;  %v254_v36 = vld [vmem:[%s3005_s1 + $0x20] sm:$0xff] (!%p213_p12)  ;;  %v255_v40 = vld [vmem:[%s3005_s1 + $0x28] sm:$0xff] (!%p213_p12)  ;;  %v257_v42 = vld [vmem:[%s3005_s1 + $0x38] sm:$0xff] (!%p213_p12)  ;;  %s2314_s8 = smov (!%p213_p12), 64   ;;  %vm1547_vm3 = vcmask (!%p213_p12), 130048  }
  0x2a   : > { %v2438_v8 = vld [vmem:[%s2435_s29] sm:$0xff] (!%p213_p12)   ;;  %v2441_v9 = vld [vmem:[%s2435_s29 + $0x8] sm:$0xff] (!%p213_p12)   ;;  %v2445_v10 = vld [vmem:[%s2435_s29 + $0x10] sm:$0xff] (!%p213_p12)   ;;  %s2315_s20 = smov (!%p213_p12), 88   ;;  %s2316_s24 = smov (!%p213_p12), 120   ;;  %vm1565_vm4 = vcmask (!%p213_p12), 261120  }
  0x2b   : > { %278 = vrot.lane.b32.xlu0 (!%p213_p12), %v2438_v8, %s2313_s3  ;;  %1883 = vmatprep.mubr.msk.bf16.mxu0 (!%p213_p12), %vm286_vm0, %v2438_v8  ;;  %v2451_v11 = vld [vmem:[%s2435_s29 + $0x18] sm:$0xff] (!%p213_p12)   ;;  %s2318_s4 = smov (!%p213_p12), 80   ;;  %s2319_s5 = smov (!%p213_p12), 112  }
  0x2c   : > { %282 = vrot.lane.b32.xlu1 (!%p213_p12), %v2445_v10, %s2313_s3  ;;  %s2321_s25 = smov (!%p213_p12), 72   ;;  %s2322_s26 = smov (!%p213_p12), 104  }
  0x2d   : > { %s2326_s6 = smov (!%p213_p12), 24   ;;  %s1741_s7 = sshll.u32 (!%p213_p12), %s219_s27, 6 }
  0x2f   : > { %280 = vrot.lane.b32.xlu0 %v2441_v9, %s2313_s3  ;;  %s1810_s9 = sshll.u32 (%p2404_p7), %s2291_s12, 4  ;;  %s1805_s27 = sshll.u32 (%p2404_p7), %s2295_s13, 5 }
  0x30   : > { %284 = vrot.lane.b32.xlu1 %v2451_v11, %s2313_s3  ;;  %s2317_s3 = smov 56  }
  0x9d   : > { %v279_v12 = vpop.permute.xlu0 %278 }
  0x9e   : > { %2003 = vmatprep.subr.msk.bf16.mxu0 %vm286_vm0, %v279_v12  ;;  %v300_v13 = vsel %vm286_vm0, %v279_v12, 0  ;;  %v283_v16 = vpop.permute.xlu1 %282 }
  0x9f   : > { %1876 = vmatpush3.bf16.xpose.msra.mxu0 %v300_v13  ;;  %v306_v17 = vsel %vm286_vm0, %v283_v16, 0 }
  0xa1   : > { %v281_v14 = vpop.permute.xlu0 %280 }
  0xa2   : > { %2004 = vmatprep.subr.msk.bf16.mxu0 %vm286_vm0, %v281_v14  ;;  %v303_v15 = vsel %vm286_vm0, %v281_v14, 0  ;;  %v285_v18 = vpop.permute.xlu1 %284 }
  0xa3   : > { %v309_v19 = vsel %vm286_vm0, %v285_v18, 0 }
  0xa7   : > { %1878 = vmatpush3.bf16.xpose.msra.mxu0 %v303_v15 }
  0xa8   : > { %2005 = vmatprep.subr.msk.bf16.mxu0 %vm286_vm0, %v283_v16 }
  0xaf   : > { %1880 = vmatpush3.bf16.xpose.msra.mxu0 %v306_v17 }
  0xb0   : > { %2006 = vmatprep.subr.msk.bf16.mxu0 %vm286_vm0, %v285_v18 }
  0xb7   : > { %1882 = vmatpush3.bf16.xpose.msra.mxu0 %v309_v19 }
  0xbe   : > { %1884 = vmatmul.mubr.msk.bf16.vlgmr.msra.gmra.mrb[0].mxu0 %vm286_vm0, %v2441_v9 }
  0xbf   : > { %1887 = vmatprep.mubr.msk.bf16.mxu0 %vm286_vm0, %v2445_v10 }
  0xc6   : > { %1888 = vmatmul.mubr.msk.bf16.gmra.mrb[4].mxu0 %vm286_vm0, %v2451_v11 }
 0x191   : > { %v1885_v21 = vpop.f32.mrb[0].mxu0 }
 0x192   : > { %v354_v23 = vadd.f32 %v1885_v21, %v252_v20  ;;  %v345_v24 = vpop.f32.mrb[1].mxu0 }
 0x193   : > { %v1886_v26 = vpop.f32.mrb[2].mxu0  ;;  %v346_v27 = vadd.f32 %v345_v24, %v250_v22 }
 0x194   : > { %v348_v28 = vpop.f32.mrb[3].mxu0  ;;  %v383_v29 = vsel %vm376_vm1, %v354_v23, -inf  ;;  %v357_v34 = vadd.f32 %v1886_v26, %v253_v30 }
 0x195   : > { %v349_v31 = vadd.f32 %v348_v28, %v251_v25  ;;  %384 = vmax.xlane.f32.xlu0 %v383_v29  ;;  %v377_v35 = vsel %vm376_vm1, %v346_v27, -inf }
 0x196   : > { %v386_v46 = vsel %vm376_vm1, %v357_v34, -inf }
 0x197   : > { %v380_v32 = vsel %vm376_vm1, %v349_v31, -inf }
 0x198   : > { %381 = vmax.xlane.f32.xlu1 %v380_v32 }
 0x199   : > { %v1889_v37 = vpop.f32.mrb[4].mxu0  ;;  %378 = vmax.xlane.f32.xlu0 %v377_v35 }
 0x19a   : > { %v370_v38 = vadd.f32 %v1889_v37, %v256_v33  ;;  %v361_v39 = vpop.f32.mrb[5].mxu0 }
 0x19b   : > { %v362_v41 = vadd.f32 %v361_v39, %v254_v36  ;;  %v1890_v43 = vpop.f32.mrb[6].mxu0 }
 0x19c   : > { %v364_v44 = vpop.f32.mrb[7].mxu0  ;;  %v395_v45 = vsel %vm376_vm1, %v370_v38, -inf  ;;  %v373_v48 = vadd.f32 %v1890_v43, %v257_v42 }
 0x19d   : > { %v2498_v47 = vadd.f32 %v364_v44, %v255_v40  ;;  %396 = vmax.xlane.f32.xlu1 %v395_v45  ;;  %387 = vmax.xlane.f32.xlu0 %v386_v46  ;;  %v389_v49 = vsel %vm376_vm1, %v362_v41, -inf }
 0x19e   : > { %v398_v51 = vsel %vm376_vm1, %v373_v48, -inf }
 0x19f   : > { %v392_v50 = vsel %vm376_vm1, %v2498_v47, -inf }
 0x1a1   : > { %390 = vmax.xlane.f32.xlu1 %v389_v49  ;;  %393 = vmax.xlane.f32.xlu0 %v392_v50 }
 0x1a5   : > { %399 = vmax.xlane.f32.xlu0 %v398_v51 }
 0x1b2   : > { %469 = vrot.lane.b32.xlu1 %v2438_v8, %s2314_s8 }
 0x1b6   : > { %473 = vrot.lane.b32.xlu1 %v2445_v10, %s2314_s8 }
 0x1ba   : > { %475 = vrot.lane.b32.xlu1 %v2451_v11, %s2314_s8 }
 0x1bb   : > { %471 = vrot.lane.b32.xlu0 %v2441_v9, %s2314_s8  ;;  %s2918_s8 = scalar_lea.vmem [#allocation3], %s1741_s7 }
 0x1be   : > { %575 = vrot.lane.b32.xlu1 %v2438_v8, %s2315_s20 }
 0x222   : > { %v385_v52 = vpop.xlane.xlu0 %384 }
 0x223   : > { %v403_v53 = vsub.f32 %v354_v23, %v385_v52 }
 0x225   : > { %v413_v54 = vmul.f32 1.442695, %v403_v53  ;;  %v382_v55 = vpop.xlane.xlu1 %381 }
 0x226   : > { %v379_v56 = vpop.xlane.xlu0 %378  ;;  %v402_v59 = vsub.f32 %v349_v31, %v382_v55 }
 0x227   : > { %2109 = vpow2.f32 %v413_v54  ;;  %v401_v57 = vsub.f32 %v346_v27, %v379_v56 }
 0x228   : > { %v411_v0 = vmul.f32 1.442695, %v402_v59 }
 0x229   : > { %v409_v58 = vmul.f32 1.442695, %v401_v57 }
 0x22a   : > { %v397_v60 = vpop.xlane.xlu1 %396  ;;  %v388_v61 = vpop.xlane.xlu0 %387 }
 0x22b   : > { %2111 = vpow2.f32 %v409_v58  ;;  %v404_v62 = vsub.f32 %v357_v34, %v388_v61  ;;  %v407_v1 = vsub.f32 %v370_v38, %v397_v60 }
 0x22d   : > { %v415_v63 = vmul.f32 1.442695, %v404_v62  ;;  %v421_v5 = vmul.f32 1.442695, %v407_v1 }
 0x22e   : > { %v391_v2 = vpop.xlane.xlu1 %390  ;;  %v394_v3 = vpop.xlane.xlu0 %393 }
 0x22f   : > { %2113 = vpow2.f32 %v415_v63  ;;  %v405_v6 = vsub.f32 %v362_v41, %v391_v2  ;;  %v406_v33 = vsub.f32 %v2498_v47, %v394_v3 }
 0x230   : > { %2115 = vpow2.f32 %v411_v0 }
 0x231   : > { %v2510_v4 = vpop.eup %2109  ;;  %2117 = vpow2.f32 %v421_v5  ;;  %v417_v15 = vmul.f32 1.442695, %v405_v6  ;;  %v419_v34 = vmul.f32 1.442695, %v406_v33 }
 0x232   : > { %v400_v7 = vpop.xlane.xlu0 %399  ;;  %v431_v12 = vsel %vm376_vm1, %v2510_v4, 0.0  ;;  %v470_v13 = vpop.permute.xlu1 %469 }
 0x233   : > { %432 = vadd.xlane.f32.xlu1 %v431_v12  ;;  %1891 = vmatprep.subr.bf16.mxu1 %v470_v13  ;;  %v408_v16 = vsub.f32 %v373_v48, %v400_v7  ;;  %2119 = vpow2.f32 %v417_v15 }
 0x234   : > { %1892 = vmatpush3.bf16.msra.mxu1 %v470_v13 }
 0x235   : > { %v2514_v14 = vpop.eup %2111  ;;  %v423_v21 = vmul.f32 1.442695, %v408_v16 }
 0x236   : > { %v425_v17 = vsel %vm376_vm1, %v2514_v14, 0.0  ;;  %v472_v18 = vpop.permute.xlu0 %471  ;;  %v474_v19 = vpop.permute.xlu1 %473 }
 0x237   : > { %426 = vadd.xlane.f32.xlu1 %v425_v17  ;;  %1893 = vmatprep.subr.bf16.mxu1 %v472_v18  ;;  %2121 = vpow2.f32 %v423_v21 }
 0x238   : > { %1894 = vmatpush3.bf16.msra.mxu1 %v472_v18  ;;  %2123 = vpow2.f32 %v419_v34  ;;  %v1757_v34 = vld [vmem:[%s3005_s1 + $0x58] sm:$0xff] }
 0x239   : > { %1895 = vmatprep.subr.bf16.mxu1 %v474_v19  ;;  %v2114_v20 = vpop.eup %2113 }
 0x23a   : > { %v476_v22 = vpop.permute.xlu1 %475  ;;  %v434_v23 = vsel %vm376_vm1, %v2114_v20, 0.0  ;;  %v2116_v24 = vpop.eup %2115 }
 0x23b   : > { %435 = vadd.xlane.f32.xlu0 %v434_v23  ;;  %v428_v26 = vsel %vm376_vm1, %v2116_v24, 0.0  ;;  %v2520_v27 = vpop.eup %2117 }
 0x23c   : > { %1896 = vmatpush3.bf16.msra.mxu1 %v474_v19  ;;  %v443_v28 = vsel %vm376_vm1, %v2520_v27, 0.0 }
 0x23d   : > { %1897 = vmatprep.subr.bf16.mxu1 %v476_v22  ;;  %v2525_v29 = vpop.eup %2119 }
 0x23e   : > { %v576_v25 = vpop.permute.xlu1 %575  ;;  %v437_v30 = vsel %vm376_vm1, %v2525_v29, 0.0 }
 0x23f   : > { %429 = vadd.xlane.f32.xlu0 %v428_v26  ;;  %v596_v55 = vsel %vm286_vm0, %v576_v25, 0  ;;  %v1754_v26 = vld [vmem:[%s3005_s1 + $0x40] sm:$0xff] }
 0x240   : > { %1898 = vmatpush3.bf16.msra.mxu1 %v476_v22 }
 0x241   : > { %2007 = vmatprep.subr.msk.bf16.mxu1 %vm286_vm0, %v576_v25  ;;  %v2529_v31 = vpop.eup %2121 }
 0x242   : > { %v446_v32 = vsel %vm376_vm1, %v2529_v31, 0.0  ;;  %v2124_v35 = vpop.eup %2123 }
 0x243   : > { %444 = vadd.xlane.f32.xlu0 %v443_v28  ;;  %v440_v36 = vsel %vm376_vm1, %v2124_v35, 0.0 }
 0x247   : > { %438 = vadd.xlane.f32.xlu0 %v437_v30 }
 0x248   : > { %579 = vrot.lane.b32.xlu1 %v2445_v10, %s2315_s20 }
 0x24b   : > { %447 = vadd.xlane.f32.xlu0 %v446_v32 }
 0x261   : > { %577 = vrot.lane.b32.xlu0 %v2441_v9, %s2315_s20 }
 0x265   : > { %567 = vrot.lane.b32.xlu0 %v2438_v8, %s2316_s24 }
 0x269   : > { %571 = vrot.lane.b32.xlu0 %v2445_v10, %s2316_s24 }
 0x26c   : > { %441 = vadd.xlane.f32.xlu1 %v440_v36 }
 0x27d   : > { %581 = vrot.lane.b32.xlu1 %v2451_v11, %s2315_s20  ;;  %s1583_s20 = sadd.s32 (%p2404_p7), %s2287_s11, %s1810_s9 }
 0x27e   : > { %s1585_s23 = sadd.s32 (%p2404_p7), %s1805_s27, %s1583_s20 }
 0x281   : > { %569 = vrot.lane.b32.xlu1 %v2441_v9, %s2316_s24 }
 0x285   : > { %573 = vrot.lane.b32.xlu1 %v2451_v11, %s2316_s24  ;;  %s2320_s24 = smov 48  }
 0x2c0   : > { %v433_v37 = vpop.xlane.xlu1 %432 }
 0x2c4   : > { %v427_v38 = vpop.xlane.xlu1 %426 }
 0x2c8   : > { %v436_v39 = vpop.xlane.xlu0 %435  ;;  %v580_v57 = vpop.permute.xlu1 %579 }
 0x2c9   : > { %2125 = vrcp.f32 %v436_v39  ;;  %v602_v58 = vsel %vm286_vm0, %v580_v57, 0 }
 0x2ca   : > { %2127 = vrcp.f32 %v427_v38 }
 0x2cb   : > { %2129 = vrcp.f32 %v433_v37  ;;  %v1760_v37 = vld [vmem:[%s3005_s1 + $0x70] sm:$0xff] }
 0x2cc   : > { %v430_v40 = vpop.xlane.xlu0 %429 }
 0x2cd   : > { %2131 = vrcp.f32 %v430_v40  ;;  %v1758_v40 = vld [vmem:[%s3005_s1 + $0x60] sm:$0xff] }
 0x2d0   : > { %v445_v41 = vpop.xlane.xlu0 %444 }
 0x2d3   : > { %v2126_v42 = vpop.eup %2125 }
 0x2d4   : > { %v439_v43 = vpop.xlane.xlu0 %438  ;;  %v2128_v44 = vpop.eup %2127  ;;  %v460_v47 = vmul.f32 %v2126_v42, %v2114_v20 }
 0x2d5   : > { %v2130_v45 = vpop.eup %2129  ;;  %v457_v49 = vmul.f32 %v2128_v44, %v2514_v14  ;;  %v1759_v44 = vld [vmem:[%s3005_s1 + $0x68] sm:$0xff] }
 0x2d6   : > { %v459_v51 = vmul.f32 %v2130_v45, %v2510_v4 }
 0x2d7   : > { %v2132_v46 = vpop.eup %2131 }
 0x2d8   : > { %v448_v48 = vpop.xlane.xlu0 %447  ;;  %v458_v50 = vmul.f32 %v2132_v46, %v2116_v24  ;;  %v466_v53 = vpack.c.bf16 %v460_v47, %v459_v51  ;;  %v1756_v24 = vld [vmem:[%s3005_s1 + $0x50] sm:$0xff]  ;;  %v1761_v46 = vld [vmem:[%s3005_s1 + $0x78] sm:$0xff] }
 0x2d9   : > { %2133 = vrcp.f32 %v448_v48 }
 0x2da   : > { %v465_v52 = vpack.c.bf16 %v458_v50, %v457_v49  ;;  %2135 = vrcp.f32 %v439_v43 }
 0x2db   : > { %2137 = vrcp.f32 %v445_v41 }
 0x2dc   : > { %1899 = vmatprep.mubr.msk.bf16.mxu1 %vm376_vm1, %v465_v52  ;;  %v578_v54 = vpop.permute.xlu0 %577 }
 0x2dd   : > { %1900 = vmatmul.mubr.msk.bf16.vlgmr.msra.gmra.mrb[0].mxu1 %vm376_vm1, %v466_v53  ;;  %v599_v56 = vsel %vm286_vm0, %v578_v54, 0 }
 0x2de   : > { %1908 = vmatpush3.bf16.xpose.msra.mxu1 %v596_v55 }
 0x2df   : > { %2008 = vmatprep.subr.msk.bf16.mxu1 %vm286_vm0, %v578_v54 }
 0x2e0   : > { %v568_v12 = vpop.permute.xlu0 %567 }
 0x2e3   : > { %v2134_v62 = vpop.eup %2133 }
 0x2e4   : > { %v2136_v63 = vpop.eup %2135  ;;  %v464_v2 = vmul.f32 %v2134_v62, %v2529_v31  ;;  %v572_v14 = vpop.permute.xlu0 %571 }
 0x2e5   : > { %v2138_v0 = vpop.eup %2137  ;;  %v461_v3 = vmul.f32 %v2136_v63, %v2525_v29  ;;  %v1755_v29 = vld [vmem:[%s3005_s1 + $0x48] sm:$0xff] }
 0x2e6   : > { %1910 = vmatpush3.bf16.xpose.msra.mxu1 %v599_v56  ;;  %v463_v5 = vmul.f32 %v2138_v0, %v2520_v27 }
 0x2e7   : > { %2009 = vmatprep.subr.msk.bf16.mxu1 %vm286_vm0, %v580_v57 }
 0x2e8   : > { %v468_v7 = vpack.c.bf16 %v464_v2, %v463_v5 }
 0x2ee   : > { %1912 = vmatpush3.bf16.xpose.msra.mxu1 %v602_v58 }
 0x2f9   : > { %v442_v59 = vpop.xlane.xlu1 %441 }
 0x2fa   : > { %2139 = vrcp.f32 %v442_v59 }
 0x2fd   : > { %v582_v60 = vpop.permute.xlu1 %581 }
 0x2fe   : > { %2010 = vmatprep.subr.msk.bf16.mxu1 %vm286_vm0, %v582_v60  ;;  %v605_v61 = vsel %vm286_vm0, %v582_v60, 0 }
 0x2ff   : > { %1914 = vmatpush3.bf16.xpose.msra.mxu1 %v605_v61 }
 0x301   : > { %v570_v13 = vpop.permute.xlu1 %569 }
 0x304   : > { %v2140_v1 = vpop.eup %2139 }
 0x305   : > { %v462_v4 = vmul.f32 %v2140_v1, %v2124_v35  ;;  %v574_v15 = vpop.permute.xlu1 %573 }
 0x307   : > { %v467_v6 = vpack.c.bf16 %v462_v4, %v461_v3 }
 0x309   : > { %1903 = vmatprep.mubr.msk.bf16.mxu1 %vm376_vm1, %v467_v6 }
 0x30a   : > { %1904 = vmatmul.mubr.msk.bf16.gmra.mrb[4].mxu1 %vm376_vm1, %v468_v7 }
 0x30b   : > { %1915 = vmatprep.mubr.msk.bf16.mxu1 %vm286_vm0, %v568_v12 }
 0x312   : > { %1916 = vmatmul.mubr.msk.bf16.vlgmr.msra.gmra.mrb[8].mxu1 %vm286_vm0, %v570_v13 }
 0x313   : > { %1919 = vmatprep.mubr.msk.bf16.mxu1 %vm286_vm0, %v572_v14 }
 0x31a   : > { %1920 = vmatmul.mubr.msk.bf16.gmra.mrb[12].mxu1 %vm286_vm0, %v574_v15 }
 0x3b0   : > { %v2565_v16 = vpop.f32.mrb[0].mxu1 }
 0x3b1   : > { %v2567_v17 = vpop.f32.mrb[1].mxu1 }
 0x3b2   : > { %v2569_v18 = vpop.f32.mrb[2].mxu1 }
 0x3b3   : > { %v2571_v19 = vpop.f32.mrb[3].mxu1 }
 0x3dd   : > { %v2573_v20 = vpop.f32.mrb[4].mxu1 }
 0x3de   : > { %v2575_v21 = vpop.f32.mrb[5].mxu1 }
 0x3df   : > { %v2577_v22 = vpop.f32.mrb[6].mxu1 }
 0x3e0   : > { %v2579_v23 = vpop.f32.mrb[7].mxu1 }
 0x3e5   : > { %v1917_v25 = vpop.f32.mrb[8].mxu1 }
 0x3e6   : > { %v650_v27 = vadd.f32 %v1917_v25, %v1756_v24  ;;  %v641_v28 = vpop.f32.mrb[9].mxu1 }
 0x3e7   : > { %v1918_v30 = vpop.f32.mrb[10].mxu1  ;;  %v642_v31 = vadd.f32 %v1754_v26, %v641_v28 }
 0x3e8   : > { %v644_v32 = vpop.f32.mrb[11].mxu1  ;;  %v678_v33 = vsel %vm376_vm1, %v650_v27, -inf  ;;  %v653_v38 = vadd.f32 %v1918_v30, %v1757_v34 }
 0x3e9   : > { %v645_v35 = vadd.f32 %v1755_v29, %v644_v32  ;;  %679 = vmax.xlane.f32.xlu0 %v678_v33  ;;  %v672_v39 = vsel %vm376_vm1, %v642_v31, -inf }
 0x3ea   : > { %v681_v48 = vsel %vm376_vm1, %v653_v38, -inf }
 0x3eb   : > { %v675_v36 = vsel %vm376_vm1, %v645_v35, -inf }
 0x3ec   : > { %676 = vmax.xlane.f32.xlu1 %v675_v36 }
 0x3ed   : > { %673 = vmax.xlane.f32.xlu0 %v672_v39  ;;  %v1921_v41 = vpop.f32.mrb[12].mxu1 }
 0x3ee   : > { %v666_v42 = vadd.f32 %v1921_v41, %v1760_v37  ;;  %v657_v43 = vpop.f32.mrb[13].mxu1 }
 0x3ef   : > { %v658_v45 = vadd.f32 %v1758_v40, %v657_v43  ;;  %v1922_v47 = vpop.f32.mrb[14].mxu1 }
 0x3f0   : > { %v690_v49 = vsel %vm376_vm1, %v666_v42, -inf  ;;  %v660_v50 = vpop.f32.mrb[15].mxu1  ;;  %v669_v52 = vadd.f32 %v1922_v47, %v1761_v46 }
 0x3f1   : > { %682 = vmax.xlane.f32.xlu0 %v681_v48  ;;  %691 = vmax.xlane.f32.xlu1 %v690_v49  ;;  %v2610_v51 = vadd.f32 %v1759_v44, %v660_v50  ;;  %v684_v53 = vsel %vm376_vm1, %v658_v45, -inf }
 0x3f2   : > { %v693_v55 = vsel %vm376_vm1, %v669_v52, -inf }
 0x3f3   : > { %v687_v54 = vsel %vm376_vm1, %v2610_v51, -inf }
 0x3f5   : > { %688 = vmax.xlane.f32.xlu0 %v687_v54  ;;  %685 = vmax.xlane.f32.xlu1 %v684_v53 }
 0x3f9   : > { %694 = vmax.xlane.f32.xlu0 %v693_v55 }
 0x406   : > { %764 = vrot.lane.b32.xlu1 %v2438_v8, %s2317_s3 }
 0x40a   : > { %768 = vrot.lane.b32.xlu1 %v2445_v10, %s2317_s3 }
 0x40e   : > { %770 = vrot.lane.b32.xlu1 %v2451_v11, %s2317_s3 }
 0x40f   : > { %766 = vrot.lane.b32.xlu0 %v2441_v9, %s2317_s3  ;;  %s2323_s3 = smov 40  }
 0x412   : > { %870 = vrot.lane.b32.xlu1 %v2438_v8, %s2318_s4 }
 0x476   : > { %v680_v56 = vpop.xlane.xlu0 %679 }
 0x477   : > { %v698_v57 = vsub.f32 %v650_v27, %v680_v56 }
 0x479   : > { %v708_v58 = vmul.f32 1.442695, %v698_v57  ;;  %v677_v59 = vpop.xlane.xlu1 %676 }
 0x47a   : > { %v674_v60 = vpop.xlane.xlu0 %673  ;;  %v697_v63 = vsub.f32 %v645_v35, %v677_v59 }
 0x47b   : > { %2141 = vpow2.f32 %v708_v58  ;;  %v696_v61 = vsub.f32 %v642_v31, %v674_v60 }
 0x47c   : > { %v706_v4 = vmul.f32 1.442695, %v697_v63 }
 0x47d   : > { %v704_v62 = vmul.f32 1.442695, %v696_v61 }
 0x47e   : > { %v692_v0 = vpop.xlane.xlu1 %691  ;;  %v683_v1 = vpop.xlane.xlu0 %682 }
 0x47f   : > { %2143 = vpow2.f32 %v704_v62  ;;  %v699_v2 = vsub.f32 %v653_v38, %v683_v1  ;;  %v702_v5 = vsub.f32 %v666_v42, %v692_v0 }
 0x481   : > { %v710_v3 = vmul.f32 1.442695, %v699_v2  ;;  %v716_v13 = vmul.f32 1.442695, %v702_v5 }
 0x482   : > { %v686_v6 = vpop.xlane.xlu1 %685  ;;  %v689_v7 = vpop.xlane.xlu0 %688 }
 0x483   : > { %2145 = vpow2.f32 %v710_v3  ;;  %v700_v14 = vsub.f32 %v658_v45, %v686_v6  ;;  %v701_v45 = vsub.f32 %v2610_v51, %v689_v7 }
 0x484   : > { %2147 = vpow2.f32 %v706_v4 }
 0x485   : > { %v2622_v12 = vpop.eup %2141  ;;  %2149 = vpow2.f32 %v716_v13  ;;  %v712_v27 = vmul.f32 1.442695, %v700_v14  ;;  %v714_v46 = vmul.f32 1.442695, %v701_v45 }
 0x486   : > { %v695_v15 = vpop.xlane.xlu0 %694  ;;  %v726_v24 = vsel %vm376_vm1, %v2622_v12, 0.0  ;;  %v765_v25 = vpop.permute.xlu1 %764 }
 0x487   : > { %727 = vadd.xlane.f32.xlu1 %v726_v24  ;;  %1923 = vmatprep.subr.bf16.mxu0 %v765_v25  ;;  %v703_v28 = vsub.f32 %v669_v52, %v695_v15  ;;  %2151 = vpow2.f32 %v712_v27 }
 0x488   : > { %1924 = vmatpush3.bf16.msra.mxu0 %v765_v25 }
 0x489   : > { %v2626_v26 = vpop.eup %2143  ;;  %v718_v33 = vmul.f32 1.442695, %v703_v28 }
 0x48a   : > { %v720_v29 = vsel %vm376_vm1, %v2626_v26, 0.0  ;;  %v767_v30 = vpop.permute.xlu0 %766  ;;  %v769_v31 = vpop.permute.xlu1 %768 }
 0x48b   : > { %721 = vadd.xlane.f32.xlu1 %v720_v29  ;;  %1925 = vmatprep.subr.bf16.mxu0 %v767_v30  ;;  %2153 = vpow2.f32 %v718_v33 }
 0x48c   : > { %1926 = vmatpush3.bf16.msra.mxu0 %v767_v30  ;;  %2155 = vpow2.f32 %v714_v46  ;;  %v1770_v46 = vld [vmem:[%s3005_s1 + $0x80] sm:$0xff] }
 0x48d   : > { %1927 = vmatprep.subr.bf16.mxu0 %v769_v31  ;;  %v2146_v32 = vpop.eup %2145 }
 0x48e   : > { %v771_v34 = vpop.permute.xlu1 %770  ;;  %v729_v35 = vsel %vm376_vm1, %v2146_v32, 0.0  ;;  %v2148_v36 = vpop.eup %2147 }
 0x48f   : > { %730 = vadd.xlane.f32.xlu0 %v729_v35  ;;  %v723_v38 = vsel %vm376_vm1, %v2148_v36, 0.0  ;;  %v2632_v39 = vpop.eup %2149 }
 0x490   : > { %1928 = vmatpush3.bf16.msra.mxu0 %v769_v31  ;;  %v738_v40 = vsel %vm376_vm1, %v2632_v39, 0.0 }
 0x491   : > { %1929 = vmatprep.subr.bf16.mxu0 %v771_v34  ;;  %v2637_v41 = vpop.eup %2151 }
 0x492   : > { %v871_v37 = vpop.permute.xlu1 %870  ;;  %v732_v42 = vsel %vm376_vm1, %v2637_v41, 0.0 }
 0x493   : > { %724 = vadd.xlane.f32.xlu0 %v723_v38  ;;  %v891_v3 = vsel %vm286_vm0, %v871_v37, 0 }
 0x494   : > { %1930 = vmatpush3.bf16.msra.mxu0 %v771_v34 }
 0x495   : > { %2011 = vmatprep.subr.msk.bf16.mxu0 %vm286_vm0, %v871_v37  ;;  %v2641_v43 = vpop.eup %2153 }
 0x496   : > { %v741_v44 = vsel %vm376_vm1, %v2641_v43, 0.0  ;;  %v2156_v47 = vpop.eup %2155 }
 0x497   : > { %739 = vadd.xlane.f32.xlu0 %v738_v40  ;;  %v735_v48 = vsel %vm376_vm1, %v2156_v47, 0.0 }
 0x49b   : > { %733 = vadd.xlane.f32.xlu0 %v732_v42 }
 0x49c   : > { %874 = vrot.lane.b32.xlu1 %v2445_v10, %s2318_s4 }
 0x49f   : > { %742 = vadd.xlane.f32.xlu0 %v741_v44  ;;  %v1772_v44 = vld [vmem:[%s3005_s1 + $0x90] sm:$0xff] }
 0x4b5   : > { %872 = vrot.lane.b32.xlu0 %v2441_v9, %s2318_s4 }
 0x4b9   : > { %862 = vrot.lane.b32.xlu0 %v2438_v8, %s2319_s5 }
 0x4bd   : > { %866 = vrot.lane.b32.xlu0 %v2445_v10, %s2319_s5 }
 0x4c0   : > { %736 = vadd.xlane.f32.xlu1 %v735_v48 }
 0x4d1   : > { %876 = vrot.lane.b32.xlu1 %v2451_v11, %s2318_s4  ;;  %s2324_s4 = smov 8  }
 0x4d5   : > { %864 = vrot.lane.b32.xlu1 %v2441_v9, %s2319_s5 }
 0x4d9   : > { %868 = vrot.lane.b32.xlu1 %v2451_v11, %s2319_s5  ;;  %s2325_s5 = smov 16  }
 0x514   : > { %v728_v49 = vpop.xlane.xlu1 %727 }
 0x518   : > { %v722_v50 = vpop.xlane.xlu1 %721 }
 0x51c   : > { %v731_v51 = vpop.xlane.xlu0 %730  ;;  %v875_v5 = vpop.permute.xlu1 %874 }
 0x51d   : > { %2157 = vrcp.f32 %v731_v51  ;;  %v897_v6 = vsel %vm286_vm0, %v875_v5, 0 }
 0x51e   : > { %2159 = vrcp.f32 %v722_v50 }
 0x51f   : > { %2161 = vrcp.f32 %v728_v49  ;;  %v1771_v49 = vld [vmem:[%s3005_s1 + $0x88] sm:$0xff] }
 0x520   : > { %v725_v52 = vpop.xlane.xlu0 %724 }
 0x521   : > { %2163 = vrcp.f32 %v725_v52 }
 0x524   : > { %v740_v53 = vpop.xlane.xlu0 %739 }
 0x527   : > { %v2158_v54 = vpop.eup %2157 }
 0x528   : > { %v734_v55 = vpop.xlane.xlu0 %733  ;;  %v2160_v56 = vpop.eup %2159  ;;  %v755_v59 = vmul.f32 %v2158_v54, %v2146_v32  ;;  %v1773_v54 = vld [vmem:[%s3005_s1 + $0x98] sm:$0xff] }
 0x529   : > { %v2162_v57 = vpop.eup %2161  ;;  %v752_v61 = vmul.f32 %v2160_v56, %v2626_v26 }
 0x52a   : > { %v754_v63 = vmul.f32 %v2162_v57, %v2622_v12  ;;  %v1776_v57 = vld [vmem:[%s3005_s1 + $0xb0] sm:$0xff] }
 0x52b   : > { %v2164_v58 = vpop.eup %2163 }
 0x52c   : > { %v743_v60 = vpop.xlane.xlu0 %742  ;;  %v753_v62 = vmul.f32 %v2164_v58, %v2148_v36  ;;  %v761_v1 = vpack.c.bf16 %v755_v59, %v754_v63 }
 0x52d   : > { %2165 = vrcp.f32 %v743_v60  ;;  %v1774_v60 = vld [vmem:[%s3005_s1 + $0xa0] sm:$0xff] }
 0x52e   : > { %v760_v0 = vpack.c.bf16 %v753_v62, %v752_v61  ;;  %2167 = vrcp.f32 %v734_v55 }
 0x52f   : > { %2169 = vrcp.f32 %v740_v53 }
 0x530   : > { %1931 = vmatprep.mubr.msk.bf16.mxu0 %vm376_vm1, %v760_v0  ;;  %v873_v2 = vpop.permute.xlu0 %872  ;;  %v1775_v0 = vld [vmem:[%s3005_s1 + $0xa8] sm:$0xff] }
 0x531   : > { %1932 = vmatmul.mubr.msk.bf16.vlgmr.msra.gmra.mrb[8].mxu0 %vm376_vm1, %v761_v1  ;;  %v894_v4 = vsel %vm286_vm0, %v873_v2, 0 }
 0x532   : > { %1940 = vmatpush3.bf16.xpose.msra.mxu0 %v891_v3 }
 0x533   : > { %2012 = vmatprep.subr.msk.bf16.mxu0 %vm286_vm0, %v873_v2  ;;  %v1777_v2 = vld [vmem:[%s3005_s1 + $0xb8] sm:$0xff] }
 0x534   : > { %v863_v32 = vpop.permute.xlu0 %862 }
 0x537   : > { %v2166_v14 = vpop.eup %2165 }
 0x538   : > { %v2168_v15 = vpop.eup %2167  ;;  %v759_v26 = vmul.f32 %v2166_v14, %v2641_v43  ;;  %v867_v34 = vpop.permute.xlu0 %866 }
 0x539   : > { %v2170_v24 = vpop.eup %2169  ;;  %v756_v27 = vmul.f32 %v2168_v15, %v2637_v41 }
 0x53a   : > { %1942 = vmatpush3.bf16.xpose.msra.mxu0 %v894_v4  ;;  %v758_v29 = vmul.f32 %v2170_v24, %v2632_v39 }
 0x53b   : > { %2013 = vmatprep.subr.msk.bf16.mxu0 %vm286_vm0, %v875_v5 }
 0x53c   : > { %v763_v31 = vpack.c.bf16 %v759_v26, %v758_v29 }
 0x542   : > { %1944 = vmatpush3.bf16.xpose.msra.mxu0 %v897_v6 }
 0x54d   : > { %v737_v7 = vpop.xlane.xlu1 %736 }
 0x54e   : > { %2171 = vrcp.f32 %v737_v7 }
 0x551   : > { %v877_v12 = vpop.permute.xlu1 %876 }
 0x552   : > { %v900_v13 = vsel %vm286_vm0, %v877_v12, 0  ;;  %2014 = vmatprep.subr.msk.bf16.mxu0 %vm286_vm0, %v877_v12 }
 0x553   : > { %1946 = vmatpush3.bf16.xpose.msra.mxu0 %v900_v13 }
 0x555   : > { %v865_v33 = vpop.permute.xlu1 %864 }
 0x558   : > { %v2172_v25 = vpop.eup %2171 }
 0x559   : > { %v757_v28 = vmul.f32 %v2172_v25, %v2156_v47  ;;  %v869_v35 = vpop.permute.xlu1 %868 }
 0x55b   : > { %v762_v30 = vpack.c.bf16 %v757_v28, %v756_v27 }
 0x55d   : > { %1935 = vmatprep.mubr.msk.bf16.mxu0 %vm376_vm1, %v762_v30 }
 0x55e   : > { %1936 = vmatmul.mubr.msk.bf16.gmra.mrb[12].mxu0 %vm376_vm1, %v763_v31 }
 0x55f   : > { %1947 = vmatprep.mubr.msk.bf16.mxu0 %vm286_vm0, %v863_v32 }
 0x566   : > { %1948 = vmatmul.mubr.msk.bf16.vlgmr.msra.gmra.mrb[16].mxu0 %vm286_vm0, %v865_v33 }
 0x567   : > { %1951 = vmatprep.mubr.msk.bf16.mxu0 %vm286_vm0, %v867_v34 }
 0x56e   : > { %1952 = vmatmul.mubr.msk.bf16.gmra.mrb[20].mxu0 %vm286_vm0, %v869_v35 }
 0x604   : > { %v2677_v36 = vpop.f32.mrb[8].mxu0 }
 0x605   : > { %v2679_v37 = vpop.f32.mrb[9].mxu0 }
 0x606   : > { %v2681_v38 = vpop.f32.mrb[10].mxu0 }
 0x607   : > { %v2683_v39 = vpop.f32.mrb[11].mxu0 }
 0x631   : > { %v2685_v40 = vpop.f32.mrb[12].mxu0 }
 0x632   : > { %v2687_v41 = vpop.f32.mrb[13].mxu0 }
 0x633   : > { %v2689_v42 = vpop.f32.mrb[14].mxu0 }
 0x634   : > { %v2691_v43 = vpop.f32.mrb[15].mxu0 }
 0x639   : > { %v1949_v45 = vpop.f32.mrb[16].mxu0 }
 0x63a   : > { %v945_v47 = vadd.f32 %v1949_v45, %v1772_v44  ;;  %v936_v48 = vpop.f32.mrb[17].mxu0 }
 0x63b   : > { %v1950_v50 = vpop.f32.mrb[18].mxu0  ;;  %v937_v51 = vadd.f32 %v1770_v46, %v936_v48 }
 0x63c   : > { %v939_v52 = vpop.f32.mrb[19].mxu0  ;;  %v973_v53 = vsel %vm376_vm1, %v945_v47, -inf  ;;  %v948_v58 = vadd.f32 %v1950_v50, %v1773_v54 }
 0x63d   : > { %v940_v55 = vadd.f32 %v1771_v49, %v939_v52  ;;  %974 = vmax.xlane.f32.xlu0 %v973_v53  ;;  %v967_v59 = vsel %vm376_vm1, %v937_v51, -inf }
 0x63e   : > { %v976_v4 = vsel %vm376_vm1, %v948_v58, -inf }
 0x63f   : > { %v970_v56 = vsel %vm376_vm1, %v940_v55, -inf }
 0x640   : > { %971 = vmax.xlane.f32.xlu1 %v970_v56 }
 0x641   : > { %968 = vmax.xlane.f32.xlu0 %v967_v59  ;;  %v1953_v61 = vpop.f32.mrb[20].mxu0 }
 0x642   : > { %v961_v62 = vadd.f32 %v1953_v61, %v1776_v57  ;;  %v952_v63 = vpop.f32.mrb[21].mxu0 }
 0x643   : > { %v953_v1 = vadd.f32 %v1774_v60, %v952_v63  ;;  %v1954_v3 = vpop.f32.mrb[22].mxu0 }
 0x644   : > { %v985_v5 = vsel %vm376_vm1, %v961_v62, -inf  ;;  %v955_v6 = vpop.f32.mrb[23].mxu0  ;;  %v964_v12 = vadd.f32 %v1954_v3, %v1777_v2 }
 0x645   : > { %977 = vmax.xlane.f32.xlu0 %v976_v4  ;;  %986 = vmax.xlane.f32.xlu1 %v985_v5  ;;  %v2722_v7 = vadd.f32 %v1775_v0, %v955_v6  ;;  %v979_v13 = vsel %vm376_vm1, %v953_v1, -inf  ;;  %v2756_v4 = vld [vmem:[%s2435_s29 + $0x10] sm:$0xff]  }
 0x646   : > { %v988_v15 = vsel %vm376_vm1, %v964_v12, -inf }
 0x647   : > { %v982_v14 = vsel %vm376_vm1, %v2722_v7, -inf }
 0x649   : > { %983 = vmax.xlane.f32.xlu0 %v982_v14  ;;  %980 = vmax.xlane.f32.xlu1 %v979_v13  ;;  %v2764_v13 = vld [vmem:[%s2435_s29 + $0x8] sm:$0xff]   ;;  %v2769_v14 = vld [vmem:[%s2435_s29] sm:$0xff]  }
 0x64d   : > { %989 = vmax.xlane.f32.xlu0 %v988_v15 }
 0x65a   : > { %1059 = vrot.lane.b32.xlu1 %v2438_v8, %s2320_s24 }
 0x65e   : > { %1063 = vrot.lane.b32.xlu1 %v2445_v10, %s2320_s24 }
 0x662   : > { %1065 = vrot.lane.b32.xlu1 %v2451_v11, %s2320_s24 }
 0x663   : > { %1061 = vrot.lane.b32.xlu0 %v2441_v9, %s2320_s24  ;;  %s1806_s24 = sshll.u32 (%p2404_p7), %s1585_s23, 3 }
 0x666   : > { %1165 = vrot.lane.b32.xlu1 %v2438_v8, %s2321_s25 }
 0x6ca   : > { %v975_v24 = vpop.xlane.xlu0 %974 }
 0x6cb   : > { %v993_v25 = vsub.f32 %v945_v47, %v975_v24 }
 0x6cd   : > { %v1003_v26 = vmul.f32 1.442695, %v993_v25  ;;  %v972_v27 = vpop.xlane.xlu1 %971  ;;  %v2775_v25 = vld [vmem:[%s2435_s29 + $0x18] sm:$0xff]   ;;  %s1587_s29 = scalar_lea.vmem (%p2404_p7), %s3006_s2, %s1806_s24 }
 0x6ce   : > { %v969_v28 = vpop.xlane.xlu0 %968  ;;  %v992_v31 = vsub.f32 %v940_v55, %v972_v27 }
 0x6cf   : > { %2173 = vpow2.f32 %v1003_v26  ;;  %v991_v29 = vsub.f32 %v937_v51, %v969_v28 }
 0x6d0   : > { %v1001_v34 = vmul.f32 1.442695, %v992_v31 }
 0x6d1   : > { %v999_v30 = vmul.f32 1.442695, %v991_v29 }
 0x6d2   : > { %v987_v32 = vpop.xlane.xlu1 %986  ;;  %v978_v33 = vpop.xlane.xlu0 %977 }
 0x6d3   : > { %2175 = vpow2.f32 %v999_v30  ;;  %v994_v10 = vsub.f32 %v948_v58, %v978_v33  ;;  %v997_v9 = vsub.f32 %v961_v62, %v987_v32 }
 0x6d5   : > { %v1005_v11 = vmul.f32 1.442695, %v994_v10  ;;  %v1011_v45 = vmul.f32 1.442695, %v997_v9 }
 0x6d6   : > { %v981_v35 = vpop.xlane.xlu1 %980  ;;  %v984_v44 = vpop.xlane.xlu0 %983 }
 0x6d7   : > { %2177 = vpow2.f32 %v1005_v11  ;;  %v995_v46 = vsub.f32 %v953_v1, %v981_v35  ;;  %v996_v6 = vsub.f32 %v2722_v7, %v984_v44 }
 0x6d8   : > { %2179 = vpow2.f32 %v1001_v34 }
 0x6d9   : > { %v2734_v8 = vpop.eup %2173  ;;  %2181 = vpow2.f32 %v1011_v45  ;;  %v1007_v51 = vmul.f32 1.442695, %v995_v46 }
 0x6da   : > { %v990_v47 = vpop.xlane.xlu0 %989  ;;  %v1021_v48 = vsel %vm376_vm1, %v2734_v8, 0.0  ;;  %v1060_v49 = vpop.permute.xlu1 %1059 }
 0x6db   : > { %1022 = vadd.xlane.f32.xlu1 %v1021_v48  ;;  %1955 = vmatprep.subr.bf16.mxu1 %v1060_v49  ;;  %v998_v52 = vsub.f32 %v964_v12, %v990_v47  ;;  %2183 = vpow2.f32 %v1007_v51  ;;  %v1009_v12 = vmul.f32 1.442695, %v996_v6 }
 0x6dc   : > { %1956 = vmatpush3.bf16.msra.mxu1 %v1060_v49 }
 0x6dd   : > { %v2738_v50 = vpop.eup %2175  ;;  %v1013_v57 = vmul.f32 1.442695, %v998_v52 }
 0x6de   : > { %v1015_v53 = vsel %vm376_vm1, %v2738_v50, 0.0  ;;  %v1062_v54 = vpop.permute.xlu0 %1061  ;;  %v1064_v55 = vpop.permute.xlu1 %1063 }
 0x6df   : > { %1016 = vadd.xlane.f32.xlu1 %v1015_v53  ;;  %1957 = vmatprep.subr.bf16.mxu1 %v1062_v54  ;;  %2185 = vpow2.f32 %v1013_v57 }
 0x6e0   : > { %1958 = vmatpush3.bf16.msra.mxu1 %v1062_v54  ;;  %2187 = vpow2.f32 %v1009_v12 }
 0x6e1   : > { %1959 = vmatprep.subr.bf16.mxu1 %v1064_v55  ;;  %v2178_v56 = vpop.eup %2177 }
 0x6e2   : > { %v1066_v58 = vpop.permute.xlu1 %1065  ;;  %v1024_v59 = vsel %vm376_vm1, %v2178_v56, 0.0  ;;  %v2180_v60 = vpop.eup %2179 }
 0x6e3   : > { %1025 = vadd.xlane.f32.xlu0 %v1024_v59  ;;  %v1018_v62 = vsel %vm376_vm1, %v2180_v60, 0.0  ;;  %v2744_v63 = vpop.eup %2181 }
 0x6e4   : > { %1960 = vmatpush3.bf16.msra.mxu1 %v1064_v55  ;;  %v1033_v0 = vsel %vm376_vm1, %v2744_v63, 0.0 }
 0x6e5   : > { %1961 = vmatprep.subr.bf16.mxu1 %v1066_v58  ;;  %v2749_v1 = vpop.eup %2183 }
 0x6e6   : > { %v1166_v61 = vpop.permute.xlu1 %1165  ;;  %v1027_v2 = vsel %vm376_vm1, %v2749_v1, 0.0 }
 0x6e7   : > { %1019 = vadd.xlane.f32.xlu0 %v1018_v62  ;;  %v1186_v48 = vsel %vm286_vm0, %v1166_v61, 0 }
 0x6e8   : > { %1962 = vmatpush3.bf16.msra.mxu1 %v1066_v58 }
 0x6e9   : > { %2015 = vmatprep.subr.msk.bf16.mxu1 %vm286_vm0, %v1166_v61  ;;  %v2753_v3 = vpop.eup %2185 }
 0x6ea   : > { %v1036_v5 = vsel %vm376_vm1, %v2753_v3, 0.0  ;;  %v2188_v15 = vpop.eup %2187 }
 0x6eb   : > { %1034 = vadd.xlane.f32.xlu0 %v1033_v0  ;;  %v1030_v24 = vsel %vm376_vm1, %v2188_v15, 0.0 }
 0x6ef   : > { %1028 = vadd.xlane.f32.xlu0 %v1027_v2 }
 0x6f0   : > { %1169 = vrot.lane.b32.xlu1 %v2756_v4, %s2321_s25 }
 0x6f3   : > { %1037 = vadd.xlane.f32.xlu0 %v1036_v5 }
 0x709   : > { %1167 = vrot.lane.b32.xlu0 %v2764_v13, %s2321_s25 }
 0x70d   : > { %1157 = vrot.lane.b32.xlu0 %v2769_v14, %s2322_s26 }
 0x711   : > { %1161 = vrot.lane.b32.xlu0 %v2756_v4, %s2322_s26 }
 0x714   : > { %1031 = vadd.xlane.f32.xlu1 %v1030_v24 }
 0x725   : > { %1171 = vrot.lane.b32.xlu1 %v2775_v25, %s2321_s25 }
 0x729   : > { %1159 = vrot.lane.b32.xlu1 %v2764_v13, %s2322_s26 }
 0x72d   : > { %1163 = vrot.lane.b32.xlu1 %v2775_v25, %s2322_s26 }
 0x768   : > { %v1023_v7 = vpop.xlane.xlu1 %1022 }
 0x76c   : > { %v1017_v26 = vpop.xlane.xlu1 %1016 }
 0x770   : > { %v1026_v27 = vpop.xlane.xlu0 %1025  ;;  %v1170_v51 = vpop.permute.xlu1 %1169 }
 0x771   : > { %2189 = vrcp.f32 %v1026_v27 }
 0x772   : > { %2191 = vrcp.f32 %v1017_v26 }
 0x773   : > { %2193 = vrcp.f32 %v1023_v7 }
 0x774   : > { %v1020_v28 = vpop.xlane.xlu0 %1019 }
 0x775   : > { %2195 = vrcp.f32 %v1020_v28  ;;  %v1786_v28 = vld [vmem:[%s3005_s1 + $0xc0] sm:$0xff] }
 0x778   : > { %v1035_v29 = vpop.xlane.xlu0 %1034 }
 0x77b   : > { %v2190_v30 = vpop.eup %2189 }
 0x77c   : > { %v1029_v31 = vpop.xlane.xlu0 %1028  ;;  %v2192_v32 = vpop.eup %2191  ;;  %v1050_v11 = vmul.f32 %v2190_v30, %v2178_v56  ;;  %v1788_v30 = vld [vmem:[%s3005_s1 + $0xd0] sm:$0xff] }
 0x77d   : > { %v2194_v33 = vpop.eup %2193  ;;  %v1047_v9 = vmul.f32 %v2192_v32, %v2738_v50  ;;  %v1787_v32 = vld [vmem:[%s3005_s1 + $0xc8] sm:$0xff] }
 0x77e   : > { %v1049_v44 = vmul.f32 %v2194_v33, %v2734_v8  ;;  %v1192_v8 = vsel %vm286_vm0, %v1170_v51, 0 }
 0x77f   : > { %v2196_v10 = vpop.eup %2195 }
 0x780   : > { %v1038_v34 = vpop.xlane.xlu0 %1037  ;;  %v1048_v35 = vmul.f32 %v2196_v10, %v2180_v60  ;;  %v1056_v46 = vpack.c.bf16 %v1050_v11, %v1049_v44  ;;  %v1789_v44 = vld [vmem:[%s3005_s1 + $0xd8] sm:$0xff] }
 0x781   : > { %2197 = vrcp.f32 %v1038_v34 }
 0x782   : > { %v1055_v45 = vpack.c.bf16 %v1048_v35, %v1047_v9  ;;  %2199 = vrcp.f32 %v1029_v31 }
 0x783   : > { %2201 = vrcp.f32 %v1035_v29 }
 0x784   : > { %1963 = vmatprep.mubr.msk.bf16.mxu1 %vm376_vm1, %v1055_v45  ;;  %v1168_v47 = vpop.permute.xlu0 %1167 }
 0x785   : > { %1964 = vmatmul.mubr.msk.bf16.vlgmr.msra.gmra.mrb[16].mxu1 %vm376_vm1, %v1056_v46  ;;  %v1189_v49 = vsel %vm286_vm0, %v1168_v47, 0  ;;  %v1790_v46 = vld [vmem:[%s3005_s1 + $0xe0] sm:$0xff] }
 0x786   : > { %1972 = vmatpush3.bf16.xpose.msra.mxu1 %v1186_v48 }
 0x787   : > { %2016 = vmatprep.subr.msk.bf16.mxu1 %vm286_vm0, %v1168_v47 }
 0x788   : > { %v1158_v2 = vpop.permute.xlu0 %1157 }
 0x78b   : > { %v2198_v54 = vpop.eup %2197 }
 0x78c   : > { %v2200_v55 = vpop.eup %2199  ;;  %v1054_v58 = vmul.f32 %v2198_v54, %v2753_v3  ;;  %v1162_v6 = vpop.permute.xlu0 %1161 }
 0x78d   : > { %v2202_v56 = vpop.eup %2201  ;;  %v1051_v59 = vmul.f32 %v2200_v55, %v2749_v1 }
 0x78e   : > { %1974 = vmatpush3.bf16.xpose.msra.mxu1 %v1189_v49  ;;  %v1053_v61 = vmul.f32 %v2202_v56, %v2744_v63 }
 0x78f   : > { %2017 = vmatprep.subr.msk.bf16.mxu1 %vm286_vm0, %v1170_v51  ;;  %v1792_v51 = vld [vmem:[%s3005_s1 + $0xf0] sm:$0xff] }
 0x790   : > { %v1058_v0 = vpack.c.bf16 %v1054_v58, %v1053_v61 }
 0x796   : > { %1976 = vmatpush3.bf16.xpose.msra.mxu1 %v1192_v8 }
 0x7a1   : > { %v1032_v50 = vpop.xlane.xlu1 %1031 }
 0x7a2   : > { %2203 = vrcp.f32 %v1032_v50  ;;  %v1791_v50 = vld [vmem:[%s3005_s1 + $0xe8] sm:$0xff] }
 0x7a5   : > { %v1172_v52 = vpop.permute.xlu1 %1171 }
 0x7a6   : > { %v1195_v53 = vsel %vm286_vm0, %v1172_v52, 0  ;;  %2018 = vmatprep.subr.msk.bf16.mxu1 %vm286_vm0, %v1172_v52 }
 0x7a7   : > { %1978 = vmatpush3.bf16.xpose.msra.mxu1 %v1195_v53 }
 0x7a9   : > { %v1160_v5 = vpop.permute.xlu1 %1159 }
 0x7ac   : > { %v2204_v57 = vpop.eup %2203 }
 0x7ad   : > { %v1052_v60 = vmul.f32 %v2204_v57, %v2188_v15  ;;  %v1164_v3 = vpop.permute.xlu1 %1163 }
 0x7af   : > { %v1057_v62 = vpack.c.bf16 %v1052_v60, %v1051_v59  ;;  %v1793_v59 = vld [vmem:[%s3005_s1 + $0xf8] sm:$0xff] }
 0x7b1   : > { %1967 = vmatprep.mubr.msk.bf16.mxu1 %vm376_vm1, %v1057_v62 }
 0x7b2   : > { %1968 = vmatmul.mubr.msk.bf16.gmra.mrb[20].mxu1 %vm376_vm1, %v1058_v0 }
 0x7b3   : > { %1979 = vmatprep.mubr.msk.bf16.mxu1 %vm286_vm0, %v1158_v2 }
 0x7ba   : > { %1980 = vmatmul.mubr.msk.bf16.vlgmr.msra.gmra.mrb[24].mxu1 %vm286_vm0, %v1160_v5 }
 0x7bb   : > { %1983 = vmatprep.mubr.msk.bf16.mxu1 %vm286_vm0, %v1162_v6 }
 0x7c2   : > { %1984 = vmatmul.mubr.msk.bf16.gmra.mrb[28].mxu1 %vm286_vm0, %v1164_v3 }
 0x858   : > { %v2801_v1 = vpop.f32.mrb[16].mxu1 }
 0x859   : > { %v2803_v63 = vpop.f32.mrb[17].mxu1 }
 0x85a   : > { %v2805_v12 = vpop.f32.mrb[18].mxu1 }
 0x85b   : > { %v2807_v15 = vpop.f32.mrb[19].mxu1 }
 0x885   : > { %v2809_v24 = vpop.f32.mrb[20].mxu1 }
 0x886   : > { %v2811_v7 = vpop.f32.mrb[21].mxu1 }
 0x887   : > { %v2813_v26 = vpop.f32.mrb[22].mxu1 }
 0x888   : > { %v2815_v27 = vpop.f32.mrb[23].mxu1 }
 0x88d   : > { %v1981_v29 = vpop.f32.mrb[24].mxu1 }
 0x88e   : > { %v1231_v31 = vpop.f32.mrb[25].mxu1  ;;  %v1240_v34 = vadd.f32 %v1981_v29, %v1788_v30 }
 0x88f   : > { %v1232_v33 = vadd.f32 %v1786_v28, %v1231_v31  ;;  %v1982_v10 = vpop.f32.mrb[26].mxu1 }
 0x890   : > { %v1234_v11 = vpop.f32.mrb[27].mxu1  ;;  %v1243_v47 = vadd.f32 %v1982_v10, %v1789_v44  ;;  %v1268_v49 = vsel %vm376_vm1, %v1240_v34, -inf }
 0x891   : > { %v1235_v9 = vadd.f32 %v1787_v32, %v1234_v11  ;;  %v1262_v35 = vsel %vm376_vm1, %v1232_v33, -inf }
 0x892   : > { %1263 = vmax.xlane.f32.xlu0 %v1262_v35  ;;  %v1271_v57 = vsel %vm376_vm1, %v1243_v47, -inf }
 0x893   : > { %v1265_v45 = vsel %vm376_vm1, %v1235_v9, -inf }
 0x894   : > { %1266 = vmax.xlane.f32.xlu1 %v1265_v45 }
 0x895   : > { %v1985_v48 = vpop.f32.mrb[28].mxu1 }
 0x896   : > { %1269 = vmax.xlane.f32.xlu0 %v1268_v49  ;;  %v1247_v8 = vpop.f32.mrb[29].mxu1  ;;  %v1256_v55 = vadd.f32 %v1985_v48, %v1792_v51 }
 0x897   : > { %v1248_v52 = vadd.f32 %v1790_v46, %v1247_v8  ;;  %v1986_v53 = vpop.f32.mrb[30].mxu1 }
 0x898   : > { %v1250_v54 = vpop.f32.mrb[31].mxu1  ;;  %v1259_v60 = vadd.f32 %v1986_v53, %v1793_v59  ;;  %v1280_v62 = vsel %vm376_vm1, %v1256_v55, -inf }
 0x899   : > { %v1251_v56 = vadd.f32 %v1791_v50, %v1250_v54  ;;  %v1274_v58 = vsel %vm376_vm1, %v1248_v52, -inf }
 0x89a   : > { %1272 = vmax.xlane.f32.xlu0 %v1271_v57  ;;  %1275 = vmax.xlane.f32.xlu1 %v1274_v58  ;;  %v1283_v0 = vsel %vm376_vm1, %v1259_v60, -inf }
 0x89b   : > { %v1277_v61 = vsel %vm376_vm1, %v1251_v56, -inf }
 0x89e   : > { %1278 = vmax.xlane.f32.xlu0 %v1277_v61  ;;  %1281 = vmax.xlane.f32.xlu1 %v1280_v62 }
 0x8a2   : > { %1284 = vmax.xlane.f32.xlu0 %v1283_v0 }
 0x8af   : > { %1354 = vrot.lane.b32.xlu1 %v2769_v14, %s2323_s3 }
 0x91f   : > { %v1264_v2 = vpop.xlane.xlu0 %1263 }
 0x920   : > { %v1286_v5 = vsub.f32 %v1232_v33, %v1264_v2 }
 0x921   : > { %v1267_v6 = vpop.xlane.xlu1 %1266 }
 0x922   : > { %v1294_v29 = vmul.f32 1.442695, %v1286_v5  ;;  %v1287_v31 = vsub.f32 %v1235_v9, %v1267_v6 }
 0x923   : > { %v1270_v3 = vpop.xlane.xlu0 %1269 }
 0x924   : > { %v1288_v28 = vsub.f32 %v1240_v34, %v1270_v3  ;;  %v1296_v45 = vmul.f32 1.442695, %v1287_v31 }
 0x926   : > { %v1298_v30 = vmul.f32 1.442695, %v1288_v28 }
 0x927   : > { %v1276_v32 = vpop.xlane.xlu1 %1275  ;;  %v1273_v10 = vpop.xlane.xlu0 %1272 }
 0x928   : > { %2205 = vpow2.f32 %v1298_v30  ;;  %v1289_v11 = vsub.f32 %v1243_v47, %v1273_v10  ;;  %v1290_v35 = vsub.f32 %v1248_v52, %v1276_v32 }
 0x929   : > { %2207 = vpow2.f32 %v1294_v29 }
 0x92a   : > { %v1300_v44 = vmul.f32 1.442695, %v1289_v11  ;;  %v1302_v14 = vmul.f32 1.442695, %v1290_v35 }
 0x92b   : > { %v1282_v46 = vpop.xlane.xlu1 %1281  ;;  %v1279_v48 = vpop.xlane.xlu0 %1278 }
 0x92c   : > { %v1292_v49 = vsub.f32 %v1256_v55, %v1282_v46  ;;  %2209 = vpow2.f32 %v1300_v44  ;;  %v1291_v51 = vsub.f32 %v1251_v56, %v1279_v48 }
 0x92d   : > { %2211 = vpow2.f32 %v1296_v45 }
 0x92e   : > { %v1306_v33 = vmul.f32 1.442695, %v1292_v49  ;;  %v1304_v52 = vmul.f32 1.442695, %v1291_v51 }
 0x92f   : > { %v1285_v34 = vpop.xlane.xlu0 %1284  ;;  %v1355_v8 = vpop.permute.xlu1 %1354 }
 0x930   : > { %2213 = vpow2.f32 %v1306_v33  ;;  %v1293_v9 = vsub.f32 %v1259_v60, %v1285_v34  ;;  %1987 = vmatprep.subr.bf16.mxu0 %v1355_v8 }
 0x931   : > { %1988 = vmatpush3.bf16.msra.mxu0 %v1355_v8  ;;  %2215 = vpow2.f32 %v1302_v14 }
 0x932   : > { %v2851_v50 = vpop.eup %2205  ;;  %v1308_v47 = vmul.f32 1.442695, %v1293_v9 }
 0x933   : > { %v1316_v53 = vsel %vm376_vm1, %v2851_v50, 0.0  ;;  %v2855_v54 = vpop.eup %2207 }
 0x934   : > { %2217 = vpow2.f32 %v1308_v47  ;;  %1317 = vadd.xlane.f32.xlu1 %v1316_v53  ;;  %v1310_v56 = vsel %vm376_vm1, %v2855_v54, 0.0 }
 0x935   : > { %2219 = vpow2.f32 %v1304_v52 }
 0x936   : > { %v2857_v55 = vpop.eup %2209 }
 0x937   : > { %v1319_v57 = vsel %vm376_vm1, %v2857_v55, 0.0  ;;  %v2212_v58 = vpop.eup %2211 }
 0x938   : > { %1311 = vadd.xlane.f32.xlu1 %v1310_v56  ;;  %1320 = vadd.xlane.f32.xlu0 %v1319_v57  ;;  %v1313_v62 = vsel %vm376_vm1, %v2212_v58, 0.0 }
 0x93a   : > { %v2863_v59 = vpop.eup %2213 }
 0x93b   : > { %v1328_v60 = vsel %vm376_vm1, %v2863_v59, 0.0  ;;  %v2867_v61 = vpop.eup %2215 }
 0x93c   : > { %1329 = vadd.xlane.f32.xlu1 %v1328_v60  ;;  %1314 = vadd.xlane.f32.xlu0 %v1313_v62  ;;  %v1322_v2 = vsel %vm376_vm1, %v2867_v61, 0.0 }
 0x93e   : > { %v2870_v0 = vpop.eup %2217 }
 0x93f   : > { %v1331_v5 = vsel %vm376_vm1, %v2870_v0, 0.0  ;;  %v2220_v6 = vpop.eup %2219 }
 0x940   : > { %1323 = vadd.xlane.f32.xlu1 %v1322_v2  ;;  %1332 = vadd.xlane.f32.xlu0 %v1331_v5  ;;  %v1325_v3 = vsel %vm376_vm1, %v2220_v6, 0.0 }
 0x944   : > { %1326 = vadd.xlane.f32.xlu0 %v1325_v3 }
 0x951   : > { %1358 = vrot.lane.b32.xlu1 %v2756_v4, %s2323_s3 }
 0x955   : > { %1360 = vrot.lane.b32.xlu1 %v2775_v25, %s2323_s3 }
 0x959   : > { %1453 = vrot.lane.b32.xlu1 %v2683_v39, %s2324_s4 }
 0x95a   : > { %1356 = vrot.lane.b32.xlu0 %v2764_v13, %s2323_s3 }
 0x95d   : > { %1457 = vrot.lane.b32.xlu1 %v2681_v38, %s2324_s4 }
 0x95e   : > { %1451 = vrot.lane.b32.xlu0 %v2679_v37, %s2324_s4 }
 0x961   : > { %1461 = vrot.lane.b32.xlu1 %v2691_v43, %s2324_s4 }
 0x962   : > { %1455 = vrot.lane.b32.xlu0 %v2677_v36, %s2324_s4 }
 0x965   : > { %1465 = vrot.lane.b32.xlu1 %v2689_v42, %s2324_s4 }
 0x966   : > { %1459 = vrot.lane.b32.xlu0 %v2687_v41, %s2324_s4 }
 0x969   : > { %1485 = vrot.lane.b32.xlu1 %v2807_v15, %s2325_s5 }
 0x96a   : > { %1463 = vrot.lane.b32.xlu0 %v2685_v40, %s2324_s4 }
 0x96d   : > { %1489 = vrot.lane.b32.xlu1 %v2805_v12, %s2325_s5 }
 0x96e   : > { %1483 = vrot.lane.b32.xlu0 %v2803_v63, %s2325_s5 }
 0x971   : > { %1493 = vrot.lane.b32.xlu1 %v2815_v27, %s2325_s5 }
 0x972   : > { %1487 = vrot.lane.b32.xlu0 %v2801_v1, %s2325_s5 }
 0x975   : > { %1497 = vrot.lane.b32.xlu1 %v2813_v26, %s2325_s5 }
 0x976   : > { %1491 = vrot.lane.b32.xlu0 %v2811_v7, %s2325_s5 }
 0x97a   : > { %1495 = vrot.lane.b32.xlu0 %v2809_v24, %s2325_s5 }
 0x9c1   : > { %v1318_v36 = vpop.xlane.xlu1 %1317 }
 0x9c5   : > { %v1312_v37 = vpop.xlane.xlu1 %1311  ;;  %v1321_v38 = vpop.xlane.xlu0 %1320 }
 0x9c6   : > { %2221 = vrcp.f32 %v1312_v37 }
 0x9c9   : > { %v1330_v39 = vpop.xlane.xlu1 %1329  ;;  %v1315_v40 = vpop.xlane.xlu0 %1314 }
 0x9ca   : > { %2223 = vrcp.f32 %v1315_v40 }
 0x9cb   : > { %2225 = vrcp.f32 %v1321_v38 }
 0x9cc   : > { %2227 = vrcp.f32 %v1318_v36 }
 0x9cd   : > { %v1333_v41 = vpop.xlane.xlu0 %1332  ;;  %v1324_v42 = vpop.xlane.xlu1 %1323 }
 0x9ce   : > { %2229 = vrcp.f32 %v1324_v42 }
 0x9d0   : > { %v2222_v4 = vpop.eup %2221 }
 0x9d1   : > { %v1327_v43 = vpop.xlane.xlu0 %1326  ;;  %v1359_v25 = vpop.permute.xlu1 %1358  ;;  %v1342_v63 = vmul.f32 %v2222_v4, %v2855_v54 }
 0x9d2   : > { %2231 = vrcp.f32 %v1327_v43 }
 0x9d3   : > { %2233 = vrcp.f32 %v1333_v41 }
 0x9d4   : > { %v2224_v13 = vpop.eup %2223  ;;  %2235 = vrcp.f32 %v1330_v39 }
 0x9d5   : > { %v1357_v1 = vpop.permute.xlu0 %1356  ;;  %v1343_v12 = vmul.f32 %v2224_v13, %v2212_v58  ;;  %v2226_v24 = vpop.eup %2225 }
 0x9d6   : > { %1989 = vmatprep.subr.bf16.mxu0 %v1357_v1  ;;  %v2228_v7 = vpop.eup %2227  ;;  %v1361_v27 = vpop.permute.xlu1 %1360  ;;  %v1345_v29 = vmul.f32 %v2226_v24, %v2857_v55 }
 0x9d7   : > { %1990 = vmatpush3.bf16.msra.mxu0 %v1357_v1  ;;  %v1350_v15 = vpack.c.bf16 %v1343_v12, %v1342_v63  ;;  %v1344_v31 = vmul.f32 %v2228_v7, %v2851_v50 }
 0x9d8   : > { %1991 = vmatprep.subr.bf16.mxu0 %v1359_v25  ;;  %v2230_v26 = vpop.eup %2229 }
 0x9d9   : > { %1995 = vmatprep.mubr.msk.bf16.mxu0 %vm376_vm1, %v1350_v15  ;;  %v1346_v32 = vmul.f32 %v2230_v26, %v2867_v61  ;;  %v1351_v10 = vpack.c.bf16 %v1345_v29, %v1344_v31  ;;  %v1452_v47 = vpop.permute.xlu0 %1451 }
 0x9da   : > { %v1454_v52 = vpop.permute.xlu1 %1453  ;;  %v1539_v41 = vsel %vm286_vm0, %v2567_v17, %v1452_v47 }
 0x9db   : > { %1992 = vmatpush3.bf16.msra.mxu0 %v1359_v25  ;;  %v1540_v4 = vsel %vm286_vm0, %v2571_v19, %v1454_v52 }
 0x9dc   : > { %v2232_v28 = vpop.eup %2231  ;;  %1993 = vmatprep.subr.bf16.mxu0 %v1361_v27 }
 0x9dd   : > { %v1347_v30 = vmul.f32 %v2232_v28, %v2220_v6  ;;  %v2234_v11 = vpop.eup %2233  ;;  %v1456_v53 = vpop.permute.xlu0 %1455 }
 0x9de   : > { %v2236_v44 = vpop.eup %2235  ;;  %v1349_v45 = vmul.f32 %v2234_v11, %v2870_v0  ;;  %v1458_v54 = vpop.permute.xlu1 %1457  ;;  %v1541_v3 = vsel %vm286_vm0, %v2565_v16, %v1456_v53 }
 0x9df   : > { %1994 = vmatpush3.bf16.msra.mxu0 %v1361_v27  ;;  %v1352_v35 = vpack.c.bf16 %v1347_v30, %v1346_v32  ;;  %v1348_v46 = vmul.f32 %v2236_v44, %v2863_v59  ;;  %v1542_v38 = vsel %vm286_vm0, %v2569_v18, %v1458_v54 }
 0x9e1   : > { %v1353_v48 = vpack.c.bf16 %v1349_v45, %v1348_v46  ;;  %v1460_v55 = vpop.permute.xlu0 %1459 }
 0x9e2   : > { %1996 = vmatmul.mubr.msk.bf16.vlgmr.msra.gmra.mrb[24].mxu0 %vm376_vm1, %v1351_v10  ;;  %v1462_v56 = vpop.permute.xlu1 %1461  ;;  %v1543_v63 = vsel %vm286_vm0, %v2575_v21, %v1460_v55 }
 0x9e3   : > { %1999 = vmatprep.mubr.msk.bf16.mxu0 %vm376_vm1, %v1352_v35  ;;  %v1544_v19 = vsel %vm286_vm0, %v2579_v23, %v1462_v56 }
 0x9e5   : > { %v1464_v57 = vpop.permute.xlu0 %1463 }
 0x9e6   : > { %v1466_v58 = vpop.permute.xlu1 %1465  ;;  %v1545_v21 = vsel %vm286_vm0, %v2573_v20, %v1464_v57 }
 0x9e7   : > { %v1546_v23 = vsel %vm286_vm0, %v2577_v22, %v1466_v58 }
 0x9e9   : > { %v1484_v59 = vpop.permute.xlu0 %1483 }
 0x9ea   : > { %2000 = vmatmul.mubr.msk.bf16.gmra.mrb[28].mxu0 %vm376_vm1, %v1353_v48  ;;  %v1486_v60 = vpop.permute.xlu1 %1485  ;;  %v1548_v18 = vsel %vm1547_vm3, %v1539_v41, %v1484_v59 }
 0x9eb   : > { %v1549_v25 = vsel %vm1547_vm3, %v1540_v4, %v1486_v60 }
 0x9ed   : > { %v1488_v61 = vpop.permute.xlu0 %1487 }
 0x9ee   : > { %v1490_v62 = vpop.permute.xlu1 %1489  ;;  %v1550_v36 = vsel %vm1547_vm3, %v1541_v3, %v1488_v61 }
 0x9ef   : > { %v1551_v40 = vsel %vm1547_vm3, %v1542_v38, %v1490_v62 }
 0x9f1   : > { %v1492_v0 = vpop.permute.xlu0 %1491 }
 0x9f2   : > { %v1494_v2 = vpop.permute.xlu1 %1493  ;;  %v1552_v12 = vsel %vm1547_vm3, %v1543_v63, %v1492_v0 }
 0x9f3   : > { %v1553_v7 = vsel %vm1547_vm3, %v1544_v19, %v1494_v2 }
 0x9f5   : > { %v1496_v5 = vpop.permute.xlu0 %1495 }
 0x9f6   : > { %v1498_v6 = vpop.permute.xlu1 %1497  ;;  %v1554_v28 = vsel %vm1547_vm3, %v1545_v21, %v1496_v5 }
 0x9f7   : > { %v1555_v31 = vsel %vm1547_vm3, %v1546_v23, %v1498_v6 }
 0xab5   : > { %v1997_v49 = vpop.f32.mrb[24].mxu0 }
 0xab6   : > { %1519 = vrot.lane.b32.xlu0 %v1997_v49, %s2326_s6  ;;  %v1412_v14 = vpop.f32.mrb[25].mxu0 }
 0xab7   : > { %v1998_v33 = vpop.f32.mrb[26].mxu0 }
 0xab8   : > { %1521 = vrot.lane.b32.xlu1 %v1998_v33, %s2326_s6  ;;  %v1415_v51 = vpop.f32.mrb[27].mxu0 }
 0xaba   : > { %1515 = vrot.lane.b32.xlu0 %v1412_v14, %s2326_s6 }
 0xabc   : > { %1517 = vrot.lane.b32.xlu1 %v1415_v51, %s2326_s6 }
 0xabd   : > { %v2001_v34 = vpop.f32.mrb[28].mxu0 }
 0xabe   : > { %v1428_v8 = vpop.f32.mrb[29].mxu0 }
 0xabf   : > { %1523 = vrot.lane.b32.xlu0 %v1428_v8, %s2326_s6  ;;  %v2002_v9 = vpop.f32.mrb[30].mxu0 }
 0xac0   : > { %v1431_v50 = vpop.f32.mrb[31].mxu0 }
 0xac1   : > { %1525 = vrot.lane.b32.xlu1 %v1431_v50, %s2326_s6 }
 0xac3   : > { %1527 = vrot.lane.b32.xlu0 %v2001_v34, %s2326_s6 }
 0xac5   : > { %1529 = vrot.lane.b32.xlu1 %v2002_v9, %s2326_s6 }
 0xb28   : > { %v1520_v37 = vpop.permute.xlu0 %1519 }
 0xb29   : > { %v1559_v39 = vsel %vm1556_vm2, %v1550_v36, %v1520_v37 }
 0xb2a   : > { %1568 = vst.msk [vmem:[%s2918_s8 + $0x10] sm:$0xff] %vm1565_vm4, %v1559_v39  ;;  %v1522_v16 = vpop.permute.xlu1 %1521 }
 0xb2b   : > { %v1560_v42 = vsel %vm1556_vm2, %v1551_v40, %v1522_v16 }
 0xb2c   : > { %1569 = vst.msk [vmem:[%s2918_s8 + $0x18] sm:$0xff] %vm1565_vm4, %v1560_v42  ;;  %v1516_v43 = vpop.permute.xlu0 %1515 }
 0xb2d   : > { %v1557_v13 = vsel %vm1556_vm2, %v1548_v18, %v1516_v43 }
 0xb2e   : > { %1566 = vst.msk [vmem:[%s2918_s8] sm:$0xff] %vm1565_vm4, %v1557_v13  ;;  %v1518_v1 = vpop.permute.xlu1 %1517 }
 0xb2f   : > { %v1558_v17 = vsel %vm1556_vm2, %v1549_v25, %v1518_v1 }
 0xb30   : > { %1567 = vst.msk [vmem:[%s2918_s8 + $0x8] sm:$0xff] %vm1565_vm4, %v1558_v17 }
 0xb31   : > { %v1524_v15 = vpop.permute.xlu0 %1523  ;;  %v1633_v11 = vld [vmem:[%s2918_s8 + $0x10] sm:$0xff] (%p2404_p7) }
 0xb32   : > { %v1561_v24 = vsel %vm1556_vm2, %v1552_v12, %v1524_v15  ;;  %1634 = vst [vmem:[%s1587_s29 + $0x20] sm:$0xff] (%p2404_p7), %v1633_v11 }
 0xb33   : > { %1570 = vst.msk [vmem:[%s2918_s8 + $0x20] sm:$0xff] %vm1565_vm4, %v1561_v24  ;;  %v1526_v26 = vpop.permute.xlu1 %1525  ;;  %1580 = sbr.rel (!%p2404_p7) target bundleno = 2882 (0xb42), region = 73  ;;  %v1635_v35 = vld [vmem:[%s2918_s8 + $0x18] sm:$0xff] (%p2404_p7) }
 0xb34   : > { %v1562_v27 = vsel %vm1556_vm2, %v1553_v7, %v1526_v26  ;;  %1636 = vst [vmem:[%s1587_s29 + $0x30] sm:$0xff] (%p2404_p7), %v1635_v35 }
 0xb35   : > { %1571 = vst.msk [vmem:[%s2918_s8 + $0x28] sm:$0xff] %vm1565_vm4, %v1562_v27  ;;  %v1528_v29 = vpop.permute.xlu0 %1527  ;;  %v1629_v20 = vld [vmem:[%s2918_s8] sm:$0xff] (%p2404_p7) }
 0xb36   : > { %v1563_v30 = vsel %vm1556_vm2, %v1554_v28, %v1528_v29  ;;  %1630 = vst [vmem:[%s1587_s29] sm:$0xff] (%p2404_p7), %v1629_v20 }
 0xb37   : > { %1572 = vst.msk [vmem:[%s2918_s8 + $0x30] sm:$0xff] %vm1565_vm4, %v1563_v30  ;;  %v1530_v32 = vpop.permute.xlu1 %1529  ;;  %v1631_v22 = vld [vmem:[%s2918_s8 + $0x8] sm:$0xff] (%p2404_p7) }
 0xb38   : > { %v1564_v10 = vsel %vm1556_vm2, %v1555_v31, %v1530_v32  ;;  %1632 = vst [vmem:[%s1587_s29 + $0x10] sm:$0xff] (%p2404_p7), %v1631_v22 }
 0xb39   : > { %1573 = vst.msk [vmem:[%s2918_s8 + $0x38] sm:$0xff] %vm1565_vm4, %v1564_v10 }
 0xb3a   : > { %v1637_v44 = vld [vmem:[%s2918_s8 + $0x20] sm:$0xff] }
 0xb3b   : > { %1638 = vst [vmem:[%s1587_s29 + $0x40] sm:$0xff] %v1637_v44 }
 0xb3c   : > { %v1639_v45 = vld [vmem:[%s2918_s8 + $0x28] sm:$0xff] }
 0xb3d   : > { %1640 = vst [vmem:[%s1587_s29 + $0x50] sm:$0xff] %v1639_v45 }
 0xb3e   : > { %v1641_v46 = vld [vmem:[%s2918_s8 + $0x30] sm:$0xff] }
 0xb3f   : > { %1642 = vst [vmem:[%s1587_s29 + $0x60] sm:$0xff] %v1641_v46 }
 0xb40   : > { %v1643_v48 = vld [vmem:[%s2918_s8 + $0x38] sm:$0xff] }
 0xb41   : > { %1644 = vst [vmem:[%s1587_s29 + $0x70] sm:$0xff] %v1643_v48 }
 0xb42 PF: > { %s12_s17 = sadd.s32 1, %s2311_s17   ;;  %s3009_s9 = smov %s2283_s10 }
 0xb43   : > { %p9_p13 = scmp.ge.s32.totalorder %s12_s17, 10   ;;  %s3010_s10 = smov %s2418_s30 }
 0xb44   : > { %s3011_s11 = smov %s2299_s14  ;;  %s3012_s12 = smov %s2303_s15 }
 0xb45   : > { %s3013_s13 = smov %s2307_s16  ;;  %s3014_s14 = smov %s3018_s18 }
 0xb46   : > { %s3015_s15 = smov %s3022_s19  ;;  %s3016_s16 = smov %s3026_s21 }
 0xb47   :  { %11 = sbr.rel (!%p9_p13) target bundleno = 5 (0x5), region = 145 }

// kernel: global_local_attention_forward.3
= control target key start
LH: loop header
LB: loop body
LE: loop exit
PB: predicated region body
PF: predicated region fallthrough
CT: control target
= control target key end

     0   :  { %s1426_s12 = smov 0   ;;  %s1428_s13 = smov 0   ;;  %s1561_s0 = inlined_call_operand.vmem [shape: bf16[512,32], index: 0, kind: input, shape index: {}]   ;;  %s1562_s1 = inlined_call_operand.vmem [shape: bf16[32,128], index: 1, kind: input, shape index: {}]   ;;  %s1563_s2 = inlined_call_operand.vmem [shape: f32[1,128], index: 2, kind: input, shape index: {}]   ;;  %s1564_s3 = inlined_call_operand.vmem [shape: bf16[512,128], index: 3, kind: output, shape index: {}]  }
   0x1   :  { %s1430_s14 = smov 0  }
   0x2 LB: > { %s32_s15 = sadd.s32 1, %s1400_s13  ;;  %p1081_p0 = scmp.ge.s32.totalorder %s1404_s14, 1  ;;  %s1404_s14 = sphi %s1430_s14, %s13_s14   ;;  %s1400_s13 = sphi %s1428_s13, %s1566_s13   ;;  %s1396_s12 = sphi %s1426_s12, %s1565_s12  }
   0x3   : > { %p34_p1 = scmp.ge.s32.totalorder %s32_s15, 2  ;;  %p188_p2 = scmp.lt.s32.totalorder %s1404_s14, 3 }
   0x5   : > { %s1568_s15 = smov (%p34_p1, %s32_s15), 0  ;;  %p189_p3 = pnand %p1081_p0, %p188_p2 }
   0x6   : > { %v1364_v0 = vld [vmem:[%s1562_s1] sm:$0xff] (!%p189_p3)   ;;  %s1082_s18 = sshll.u32 (!%p189_p3), %s1396_s12, 5  ;;  %v1365_v1 = vld [vmem:[%s1562_s1 + $0x8] sm:$0xff] (!%p189_p3)   ;;  %vm456_vm0 = vcmask (!%p189_p3), 261120  }
   0x7   : > { %192 = sbr.rel (%p189_p3) target bundleno = 264 (0x108), region = 32  ;;  %p230_p4 = scmp.lt.s32.totalorder (!%p189_p3), %s1082_s18, 63  ;;  %1300 = vmatprep.subr.bf16.mxu0 (!%p189_p3), %v1364_v0  ;;  %1336 = vmatprep.subr.bf16.mxu1 (!%p189_p3), %v1364_v0  ;;  %v1495_v19 = vld [vmem:[%s1563_s2] ss:$0 sm:$0xff] (!%p189_p3) }
   0x8   : > { %1301 = vmatpush3.bf16.msra.mxu0 (!%p189_p3), %v1364_v0  ;;  %1338 = vmatpush3.bf16.msra.mxu1 (!%p189_p3), %v1364_v0 }
   0x9   : > { %1302 = vmatprep.subr.bf16.mxu0 (!%p189_p3), %v1365_v1  ;;  %1337 = vmatprep.subr.bf16.mxu1 (!%p189_p3), %v1365_v1 }
   0xc   : > { %1303 = vmatpush3.bf16.msra.mxu0 (!%p189_p3), %v1365_v1  ;;  %1339 = vmatpush3.bf16.msra.mxu1 (!%p189_p3), %v1365_v1 }
   0xe   : > { %s1570_s18 = smov (!%p230_p4, %s1082_s18), 63 }
   0xf   : > { %s1083_s21 = sshll.u32 %s1570_s18, 2 }
  0x10   : > { %s1458_s24 = scalar_lea.vmem %s1561_s0, %s1083_s21  ;;  %s1506_s29 = scalar_lea.vmem %s1564_s3, %s1083_s21 }
  0x11   : > { %v1366_v2 = vld [vmem:[%s1458_s24] sm:$0xff]   ;;  %v1368_v4 = vld [vmem:[%s1458_s24 + $0x8] sm:$0xff]   ;;  %v1370_v6 = vld [vmem:[%s1458_s24 + $0x10] sm:$0xff]  }
  0x12   : > { %v1367_v3 = vld [vmem:[%s1458_s24 + $0x40] sm:$0xff]   ;;  %1304 = vmatprep.mubr.msk.bf16.mxu0 %vm456_vm0, %v1366_v2  ;;  %v1369_v5 = vld [vmem:[%s1458_s24 + $0x48] sm:$0xff]   ;;  %v1371_v7 = vld [vmem:[%s1458_s24 + $0x50] sm:$0xff]  }
  0x13   : > { %1320 = vmatprep.mubr.msk.bf16.mxu1 %vm456_vm0, %v1367_v3  ;;  %1305 = vmatmul.mubr.msk.bf16.vlgmr.msra.gmra.mrb[0].mxu0 %vm456_vm0, %v1368_v4  ;;  %v1372_v8 = vld [vmem:[%s1458_s24 + $0x18] sm:$0xff]   ;;  %v1374_v10 = vld [vmem:[%s1458_s24 + $0x20] sm:$0xff]   ;;  %v1376_v12 = vld [vmem:[%s1458_s24 + $0x28] sm:$0xff]  }
  0x14   : > { %1321 = vmatmul.mubr.msk.bf16.vlgmr.msra.gmra.mrb[0].mxu1 %vm456_vm0, %v1369_v5  ;;  %1308 = vmatprep.mubr.msk.bf16.mxu0 %vm456_vm0, %v1370_v6  ;;  %v1373_v9 = vld [vmem:[%s1458_s24 + $0x58] sm:$0xff]   ;;  %v1375_v11 = vld [vmem:[%s1458_s24 + $0x60] sm:$0xff]   ;;  %v1377_v13 = vld [vmem:[%s1458_s24 + $0x68] sm:$0xff]  }
  0x15   : > { %1324 = vmatprep.mubr.msk.bf16.mxu1 %vm456_vm0, %v1371_v7  ;;  %v1378_v14 = vld [vmem:[%s1458_s24 + $0x30] sm:$0xff]   ;;  %v1380_v16 = vld [vmem:[%s1458_s24 + $0x38] sm:$0xff]  }
  0x16   : > { %v1379_v15 = vld [vmem:[%s1458_s24 + $0x70] sm:$0xff]   ;;  %v1381_v17 = vld [vmem:[%s1458_s24 + $0x78] sm:$0xff]  }
  0x1b   : > { %1309 = vmatmul.mubr.msk.bf16.gmra.mrb[4].mxu0 %vm456_vm0, %v1372_v8 }
  0x1c   : > { %1325 = vmatmul.mubr.msk.bf16.gmra.mrb[4].mxu1 %vm456_vm0, %v1373_v9  ;;  %1312 = vmatprep.mubr.msk.bf16.mxu0 %vm456_vm0, %v1374_v10 }
  0x1d   : > { %1328 = vmatprep.mubr.msk.bf16.mxu1 %vm456_vm0, %v1375_v11 }
  0x23   : > { %1313 = vmatmul.mubr.msk.bf16.gmra.mrb[8].mxu0 %vm456_vm0, %v1376_v12 }
  0x24   : > { %1329 = vmatmul.mubr.msk.bf16.gmra.mrb[8].mxu1 %vm456_vm0, %v1377_v13  ;;  %1316 = vmatprep.mubr.msk.bf16.mxu0 %vm456_vm0, %v1378_v14 }
  0x25   : > { %1332 = vmatprep.mubr.msk.bf16.mxu1 %vm456_vm0, %v1379_v15 }
  0x2b   : > { %1317 = vmatmul.mubr.msk.bf16.gmra.mrb[12].mxu0 %vm456_vm0, %v1380_v16 }
  0x2c   : > { %1333 = vmatmul.mubr.msk.bf16.gmra.mrb[12].mxu1 %vm456_vm0, %v1381_v17 }
  0xe6   : > { %v1306_v18 = vpop.f32.mrb[0].mxu0 }
  0xe7   : > { %v1322_v20 = vpop.f32.mrb[0].mxu1  ;;  %v539_v21 = vpop.f32.mrb[1].mxu0  ;;  %v774_v24 = vadd.f32 %v1306_v18, %v1495_v19 }
  0xe8   : > { %v603_v22 = vpop.f32.mrb[1].mxu1  ;;  %v1307_v23 = vpop.f32.mrb[2].mxu0  ;;  %v790_v28 = vadd.f32 %v1322_v20, %v1495_v19  ;;  %v772_v29 = vadd.f32 %v1495_v19, %v539_v21 }
  0xe9   : > { %v775_v25 = vadd.f32 %v1307_v23, %v1495_v19  ;;  %v1323_v26 = vpop.f32.mrb[2].mxu1  ;;  %v542_v27 = vpop.f32.mrb[3].mxu0  ;;  %v788_v33 = vadd.f32 %v1495_v19, %v603_v22 }
  0xea   : > { %v791_v30 = vadd.f32 %v1323_v26, %v1495_v19  ;;  %v773_v31 = vadd.f32 %v1495_v19, %v542_v27  ;;  %v606_v32 = vpop.f32.mrb[3].mxu1 }
  0xeb   : > { %v1195_v34 = vpack.c.bf16 %v775_v25, %v774_v24  ;;  %v789_v35 = vadd.f32 %v1495_v19, %v606_v32 }
  0xec   : > { %v1235_v36 = vpack.c.bf16 %v791_v30, %v790_v28  ;;  %v1190_v37 = vpack.c.bf16 %v773_v31, %v772_v29 }
  0xed   : > { %1267 = vst [vmem:[%s1506_s29 + $0x8] sm:$0xff] %v1195_v34   ;;  %v1230_v38 = vpack.c.bf16 %v789_v35, %v788_v33 }
  0xee   : > { %1275 = vst [vmem:[%s1506_s29 + $0x48] sm:$0xff] %v1235_v36   ;;  %1191 = vst [vmem:[%s1506_s29] sm:$0xff] %v1190_v37   ;;  %v1310_v39 = vpop.f32.mrb[4].mxu0 }
  0xef   : > { %1274 = vst [vmem:[%s1506_s29 + $0x40] sm:$0xff] %v1230_v38   ;;  %v1326_v40 = vpop.f32.mrb[4].mxu1  ;;  %v555_v41 = vpop.f32.mrb[5].mxu0  ;;  %v778_v44 = vadd.f32 %v1310_v39, %v1495_v19 }
  0xf0   : > { %v619_v42 = vpop.f32.mrb[5].mxu1  ;;  %v1311_v43 = vpop.f32.mrb[6].mxu0  ;;  %v794_v48 = vadd.f32 %v1326_v40, %v1495_v19  ;;  %v776_v49 = vadd.f32 %v1495_v19, %v555_v41 }
  0xf1   : > { %v779_v45 = vadd.f32 %v1311_v43, %v1495_v19  ;;  %v1327_v46 = vpop.f32.mrb[6].mxu1  ;;  %v558_v47 = vpop.f32.mrb[7].mxu0  ;;  %v792_v53 = vadd.f32 %v1495_v19, %v619_v42 }
  0xf2   : > { %v795_v50 = vadd.f32 %v1327_v46, %v1495_v19  ;;  %v777_v51 = vadd.f32 %v1495_v19, %v558_v47  ;;  %v622_v52 = vpop.f32.mrb[7].mxu1 }
  0xf3   : > { %v1205_v54 = vpack.c.bf16 %v779_v45, %v778_v44  ;;  %v793_v55 = vadd.f32 %v1495_v19, %v622_v52 }
  0xf4   : > { %v1245_v56 = vpack.c.bf16 %v795_v50, %v794_v48  ;;  %v1200_v57 = vpack.c.bf16 %v777_v51, %v776_v49 }
  0xf5   : > { %1269 = vst [vmem:[%s1506_s29 + $0x18] sm:$0xff] %v1205_v54   ;;  %v1240_v58 = vpack.c.bf16 %v793_v55, %v792_v53 }
  0xf6   : > { %1277 = vst [vmem:[%s1506_s29 + $0x58] sm:$0xff] %v1245_v56   ;;  %1268 = vst [vmem:[%s1506_s29 + $0x10] sm:$0xff] %v1200_v57   ;;  %v1314_v59 = vpop.f32.mrb[8].mxu0 }
  0xf7   : > { %1276 = vst [vmem:[%s1506_s29 + $0x50] sm:$0xff] %v1240_v58   ;;  %v1330_v60 = vpop.f32.mrb[8].mxu1  ;;  %v571_v61 = vpop.f32.mrb[9].mxu0  ;;  %v782_v0 = vadd.f32 %v1314_v59, %v1495_v19 }
  0xf8   : > { %v635_v62 = vpop.f32.mrb[9].mxu1  ;;  %v1315_v63 = vpop.f32.mrb[10].mxu0  ;;  %v798_v4 = vadd.f32 %v1330_v60, %v1495_v19  ;;  %v780_v5 = vadd.f32 %v1495_v19, %v571_v61 }
  0xf9   : > { %v783_v1 = vadd.f32 %v1315_v63, %v1495_v19  ;;  %v1331_v2 = vpop.f32.mrb[10].mxu1  ;;  %v574_v3 = vpop.f32.mrb[11].mxu0  ;;  %v796_v9 = vadd.f32 %v1495_v19, %v635_v62 }
  0xfa   : > { %v799_v6 = vadd.f32 %v1331_v2, %v1495_v19  ;;  %v781_v7 = vadd.f32 %v1495_v19, %v574_v3  ;;  %v638_v8 = vpop.f32.mrb[11].mxu1 }
  0xfb   : > { %v1215_v10 = vpack.c.bf16 %v783_v1, %v782_v0  ;;  %v797_v11 = vadd.f32 %v1495_v19, %v638_v8 }
  0xfc   : > { %v1255_v12 = vpack.c.bf16 %v799_v6, %v798_v4  ;;  %v1210_v13 = vpack.c.bf16 %v781_v7, %v780_v5 }
  0xfd   : > { %1271 = vst [vmem:[%s1506_s29 + $0x28] sm:$0xff] %v1215_v10   ;;  %v1250_v14 = vpack.c.bf16 %v797_v11, %v796_v9 }
  0xfe   : > { %1279 = vst [vmem:[%s1506_s29 + $0x68] sm:$0xff] %v1255_v12   ;;  %1270 = vst [vmem:[%s1506_s29 + $0x20] sm:$0xff] %v1210_v13   ;;  %v1318_v15 = vpop.f32.mrb[12].mxu0 }
  0xff   : > { %1278 = vst [vmem:[%s1506_s29 + $0x60] sm:$0xff] %v1250_v14   ;;  %v1334_v16 = vpop.f32.mrb[12].mxu1  ;;  %v587_v17 = vpop.f32.mrb[13].mxu0  ;;  %v786_v21 = vadd.f32 %v1318_v15, %v1495_v19 }
 0x100   : > { %v651_v18 = vpop.f32.mrb[13].mxu1  ;;  %v1319_v20 = vpop.f32.mrb[14].mxu0  ;;  %v802_v25 = vadd.f32 %v1334_v16, %v1495_v19  ;;  %v784_v26 = vadd.f32 %v1495_v19, %v587_v17 }
 0x101   : > { %v787_v22 = vadd.f32 %v1319_v20, %v1495_v19  ;;  %v1335_v23 = vpop.f32.mrb[14].mxu1  ;;  %v590_v24 = vpop.f32.mrb[15].mxu0  ;;  %v800_v30 = vadd.f32 %v1495_v19, %v651_v18 }
 0x102   : > { %v803_v27 = vadd.f32 %v1335_v23, %v1495_v19  ;;  %v785_v28 = vadd.f32 %v1495_v19, %v590_v24  ;;  %v654_v29 = vpop.f32.mrb[15].mxu1 }
 0x103   : > { %v1225_v31 = vpack.c.bf16 %v787_v22, %v786_v21  ;;  %v801_v32 = vadd.f32 %v1495_v19, %v654_v29 }
 0x104   : > { %v1265_v33 = vpack.c.bf16 %v803_v27, %v802_v25  ;;  %v1220_v34 = vpack.c.bf16 %v785_v28, %v784_v26 }
 0x105   : > { %1273 = vst [vmem:[%s1506_s29 + $0x38] sm:$0xff] %v1225_v31   ;;  %v1260_v35 = vpack.c.bf16 %v801_v32, %v800_v30 }
 0x106   : > { %1281 = vst [vmem:[%s1506_s29 + $0x78] sm:$0xff] %v1265_v33   ;;  %1272 = vst [vmem:[%s1506_s29 + $0x30] sm:$0xff] %v1220_v34  }
 0x107   : > { %1280 = vst [vmem:[%s1506_s29 + $0x70] sm:$0xff] %v1260_v35  }
 0x108 PF: > { %s13_s14 = sadd.s32 1, %s1404_s14   ;;  %s1565_s12 = smov %s1400_s13 }
 0x109   : > { %p10_p5 = scmp.ge.s32.totalorder %s13_s14, 4   ;;  %s1566_s13 = smov %s1568_s15 }
 0x10b   :  { %12 = sbr.rel (!%p10_p5) target bundleno = 2 (0x2), region = 76 }

// kernel: global_local_attention_forward.5
= control target key start
LH: loop header
LB: loop body
LE: loop exit
PB: predicated region body
PF: predicated region fallthrough
CT: control target
= control target key end

     0   :  { %8 = vsyncpa [#allocation4], 0  ;;  %s1573_s0 = inlined_call_operand.vmem [shape: bf16[512,32], index: 0, kind: input, shape index: {}]   ;;  %s1574_s1 = inlined_call_operand.vmem [shape: bf16[32,32], index: 1, kind: input, shape index: {}]   ;;  %s1575_s2 = inlined_call_operand.vmem [shape: f32[1,32], index: 2, kind: input, shape index: {}]   ;;  %s1576_s3 = inlined_call_operand.hbm [shape: f32[512,32], index: 3, kind: output, shape index: {}]  }
   0x1   :  { %10 = vsyncpa [#allocation4 + $0x1], 0  ;;  %s1241_s12 = smov 0   ;;  %s1243_s13 = smov 0  }
   0x2   :  { %s1245_s14 = smov 0   ;;  %s1247_s15 = smov 0  }
   0x3   :  { %s1249_s16 = smov 0   ;;  %s1251_s17 = smov 0  }
   0x4 LB: > { %s952_s18 = sadd.s32 4294967295, %s1215_s17   ;;  %s953_s19 = sadd.s32 4294967294, %s1215_s17   ;;  %s1215_s17 = sphi %s1251_s17, %s16_s17   ;;  %s1211_s16 = sphi %s1249_s16, %s1583_s16   ;;  %s1207_s15 = sphi %s1247_s15, %s1582_s15   ;;  %s1203_s14 = sphi %s1245_s14, %s1581_s14   ;;  %s1199_s13 = sphi %s1243_s13, %s1580_s13   ;;  %s1195_s12 = sphi %s1241_s12, %s1579_s12  }
   0x5   : > { %s35_s20 = sadd.s32 1, %s1211_s16  ;;  %s126_s21 = sadd.s32 1, %s1203_s14 }
   0x6   : > { %p37_p0 = scmp.ge.s32.totalorder %s35_s20, 2  ;;  %p136_p1 = scmp.ne.s32.totalorder %s1203_s14, %s1199_s13 }
   0x7   : > { %p137_p2 = scmp.eq.s32.totalorder %s952_s18, 1  ;;  %p142_p3 = scmp.ne.s32.totalorder %s1199_s13, %s1195_s12 }
   0x8   : > { %s1585_s20 = smov (%p37_p0, %s35_s20), 0  ;;  %p143_p5 = scmp.eq.s32.totalorder %s953_s19, 1 }
   0x9   : > { %p1281_p4 = por %p137_p2, %p136_p1  ;;  %s121_s23 = ssub.s32 %s1211_s16, %s1585_s20 }
   0xa   : > { %p958_p6 = scmp.ge.s32.totalorder %s1215_s17, 1  ;;  %p124_p7 = scmp.eq.s32.totalorder %s121_s23, 0 }
   0xb   : > { %p1288_p8 = por %p143_p5, %p142_p3  ;;  %p191_p9 = scmp.lt.s32.totalorder %s1215_s17, 3 }
   0xc   : > { %s1294_s25 = scalar_select %p124_p7, %s1203_s14, %s126_s21  }
   0xd   : > { %p192_p10 = pnand %p958_p6, %p191_p9 }
   0xe   : > { %v1119_v0 = vld [vmem:[%s1574_s1] sm:$0xff] (!%p192_p10)   ;;  %s960_s28 = sshll.u32 (!%p192_p10), %s1207_s15, 5  ;;  %v1120_v1 = vld [vmem:[%s1574_s1 + $0x8] sm:$0xff] (!%p192_p10)   ;;  %vm256_vm0 = vcmask (!%p192_p10), 261120   ;;  %v1217_v2 = vmov (!%p192_p10), 0.0   ;;  %s226_s8 = sand.u32 (!%p192_p10), 1, %s1199_s13  }
   0xf   : > { %195 = sbr.rel (%p192_p10) target bundleno = 296 (0x128), region = 32  ;;  %p230_p11 = scmp.lt.s32.totalorder (!%p192_p10), %s960_s28, 63  ;;  %1021 = vmatprep.subr.bf16.mxu0 (!%p192_p10), %v1119_v0  ;;  %1057 = vmatprep.subr.bf16.mxu1 (!%p192_p10), %v1119_v0  ;;  %259 = vst.msk [vmem:[#allocation2 + $0x10] sm:$0xff] (!%p192_p10), %vm256_vm0, %v1217_v2  ;;  %257 = vst.msk [vmem:[#allocation2] sm:$0xff] (!%p192_p10), %vm256_vm0, %v1217_v2  ;;  %v1391_v46 = vld [vmem:[%s1575_s2] ss:$0 sm:$0xff] (!%p192_p10) }
  0x10   : > { %1022 = vmatpush3.bf16.msra.mxu0 (!%p192_p10), %v1119_v0  ;;  %1059 = vmatpush3.bf16.msra.mxu1 (!%p192_p10), %v1119_v0  ;;  %258 = vst.msk [vmem:[#allocation2 + $0x8] sm:$0xff] (!%p192_p10), %vm256_vm0, %v1217_v2  ;;  %260 = vst.msk [vmem:[#allocation2 + $0x18] sm:$0xff] (!%p192_p10), %vm256_vm0, %v1217_v2  ;;  %s1385_s9 = sshll.u32 (!%p192_p10), %s226_s8, 8  ;;  %s1002_s19 = sshll.u32 (!%p192_p10), %s1207_s15, 12 }
  0x11   : > { %261 = vst.msk [vmem:[#allocation2 + $0x20] sm:$0xff] (!%p192_p10), %vm256_vm0, %v1217_v2  ;;  %262 = vst.msk [vmem:[#allocation2 + $0x28] sm:$0xff] (!%p192_p10), %vm256_vm0, %v1217_v2  ;;  %1023 = vmatprep.subr.bf16.mxu0 (!%p192_p10), %v1120_v1  ;;  %1058 = vmatprep.subr.bf16.mxu1 (!%p192_p10), %v1120_v1  ;;  %s1400_s18 = scalar_lea.vmem (!%p192_p10), [#allocation3], %s1385_s9  ;;  %s1510_s26 = scalar_lea.hbm (!%p192_p10), %s1576_s3, %s1002_s19 }
  0x12   : > { %263 = vst.msk [vmem:[#allocation2 + $0x30] sm:$0xff] (!%p192_p10), %vm256_vm0, %v1217_v2  ;;  %264 = vst.msk [vmem:[#allocation2 + $0x38] sm:$0xff] (!%p192_p10), %vm256_vm0, %v1217_v2  ;;  %s844_s21 = sshll.u32 (!%p192_p10), %s1400_s18, 4  ;;  %s1527_s27 = scalar_lea.sflag (!%p192_p10), [#allocation4], %s226_s8  ;;  %s1512_s21 = int_to_ptr.vmem [resolvable:$true] %s844_s21 }
  0x13   : > { %265 = vst.msk [vmem:[#allocation2 + $0x40] sm:$0xff] (!%p192_p10), %vm256_vm0, %v1217_v2  ;;  %266 = vst.msk [vmem:[#allocation2 + $0x48] sm:$0xff] (!%p192_p10), %vm256_vm0, %v1217_v2  ;;  %s1218_s29 = smov (!%p192_p10), [#allocation3]  }
  0x14   : > { %267 = vst.msk [vmem:[#allocation2 + $0x50] sm:$0xff] (!%p192_p10), %vm256_vm0, %v1217_v2  ;;  %268 = vst.msk [vmem:[#allocation2 + $0x58] sm:$0xff] (!%p192_p10), %vm256_vm0, %v1217_v2  ;;  %1024 = vmatpush3.bf16.msra.mxu0 (!%p192_p10), %v1120_v1  ;;  %1060 = vmatpush3.bf16.msra.mxu1 (!%p192_p10), %v1120_v1  ;;  %s1141_s30 = sshll.u32 (!%p192_p10), %s1218_s29, 4  ;;  %s1142_s30 = int_to_ptr.vmem [resolvable:$false] %s1141_s30 }
  0x15   : > { %269 = vst.msk [vmem:[#allocation2 + $0x60] sm:$0xff] (!%p192_p10), %vm256_vm0, %v1217_v2  ;;  %270 = vst.msk [vmem:[#allocation2 + $0x68] sm:$0xff] (!%p192_p10), %vm256_vm0, %v1217_v2  ;;  %p1144_p1 = scmp.lt.s32.totalorder (!%p192_p10), %s1512_s21, %s1142_s30 }
  0x16   : > { %s1587_s28 = smov (!%p230_p11, %s960_s28), 63  ;;  %271 = vst.msk [vmem:[#allocation2 + $0x70] sm:$0xff] %vm256_vm0, %v1217_v2  ;;  %272 = vst.msk [vmem:[#allocation2 + $0x78] sm:$0xff] %vm256_vm0, %v1217_v2  ;;  %v291_v19 = vld [vmem:[#allocation2 + $0x10] sm:$0xff]  ;;  %v289_v21 = vld [vmem:[#allocation2] sm:$0xff] }
  0x17   : > { %273 = vst.msk [vmem:[#allocation2 + $0x80] sm:$0xff] %vm256_vm0, %v1217_v2  ;;  %274 = vst.msk [vmem:[#allocation2 + $0x88] sm:$0xff] %vm256_vm0, %v1217_v2  ;;  %s961_s4 = sshll.u32 %s1587_s28, 2  ;;  %v292_v24 = vld [vmem:[#allocation2 + $0x18] sm:$0xff]  ;;  %v290_v29 = vld [vmem:[#allocation2 + $0x8] sm:$0xff]  ;;  %s1137_s28 = scalar_lea.vmem %s1512_s21, 4096 }
  0x18   : > { %275 = vst.msk [vmem:[#allocation2 + $0x90] sm:$0xff] %vm256_vm0, %v1217_v2  ;;  %276 = vst.msk [vmem:[#allocation2 + $0x98] sm:$0xff] %vm256_vm0, %v1217_v2  ;;  %s1341_s7 = scalar_lea.vmem %s1573_s0, %s961_s4  ;;  %v293_v45 = vld [vmem:[#allocation2 + $0x20] sm:$0xff]  ;;  %v294_v54 = vld [vmem:[#allocation2 + $0x28] sm:$0xff]  ;;  %p1138_p12 = scmp.ne.s32.totalorder %s1512_s21, %s1137_s28 }
  0x19   : > { %277 = vst.msk [vmem:[#allocation2 + $0xa0] sm:$0xff] %vm256_vm0, %v1217_v2  ;;  %278 = vst.msk [vmem:[#allocation2 + $0xa8] sm:$0xff] %vm256_vm0, %v1217_v2  ;;  %v1121_v3 = vld [vmem:[%s1341_s7] sm:$0xff]   ;;  %v1123_v5 = vld [vmem:[%s1341_s7 + $0x8] sm:$0xff]   ;;  %s1143_s4 = scalar_lea.vmem %s1142_s30, 8192 }
  0x1a   : > { %279 = vst.msk [vmem:[#allocation2 + $0xb0] sm:$0xff] %vm256_vm0, %v1217_v2  ;;  %280 = vst.msk [vmem:[#allocation2 + $0xb8] sm:$0xff] %vm256_vm0, %v1217_v2  ;;  %v1122_v4 = vld [vmem:[%s1341_s7 + $0x40] sm:$0xff]   ;;  %1025 = vmatprep.mubr.msk.bf16.mxu0 %vm256_vm0, %v1121_v3  ;;  %v1124_v6 = vld [vmem:[%s1341_s7 + $0x48] sm:$0xff]   ;;  %p1139_p13 = pnand %p1138_p12, %p1281_p4  ;;  %p1145_p2 = scmp.lt.s32.totalorder %s1143_s4, %s1137_s28 }
  0x1b   : > { %281 = vst.msk [vmem:[#allocation2 + $0xc0] sm:$0xff] %vm256_vm0, %v1217_v2  ;;  %282 = vst.msk [vmem:[#allocation2 + $0xc8] sm:$0xff] %vm256_vm0, %v1217_v2  ;;  %1041 = vmatprep.mubr.msk.bf16.mxu1 %vm256_vm0, %v1122_v4  ;;  %1026 = vmatmul.mubr.msk.bf16.vlgmr.msra.gmra.mrb[0].mxu0 %vm256_vm0, %v1123_v5  ;;  %v1125_v7 = vld [vmem:[%s1341_s7 + $0x10] sm:$0xff]   ;;  %v1127_v9 = vld [vmem:[%s1341_s7 + $0x18] sm:$0xff]  }
  0x1c   : > { %283 = vst.msk [vmem:[#allocation2 + $0xd0] sm:$0xff] %vm256_vm0, %v1217_v2  ;;  %284 = vst.msk [vmem:[#allocation2 + $0xd8] sm:$0xff] %vm256_vm0, %v1217_v2  ;;  %1042 = vmatmul.mubr.msk.bf16.vlgmr.msra.gmra.mrb[0].mxu1 %vm256_vm0, %v1124_v6  ;;  %v1126_v8 = vld [vmem:[%s1341_s7 + $0x50] sm:$0xff]   ;;  %1029 = vmatprep.mubr.msk.bf16.mxu0 %vm256_vm0, %v1125_v7  ;;  %v1128_v10 = vld [vmem:[%s1341_s7 + $0x58] sm:$0xff]   ;;  %p1140_p0 = pneg %p1139_p13  ;;  %p1146_p3 = por %p1145_p2, %p1144_p1 }
  0x1d   : > { %285 = vst.msk [vmem:[#allocation2 + $0xe0] sm:$0xff] %vm256_vm0, %v1217_v2  ;;  %286 = vst.msk [vmem:[#allocation2 + $0xe8] sm:$0xff] %vm256_vm0, %v1217_v2  ;;  %1045 = vmatprep.mubr.msk.bf16.mxu1 %vm256_vm0, %v1126_v8  ;;  %v1129_v11 = vld [vmem:[%s1341_s7 + $0x20] sm:$0xff]   ;;  %v1131_v13 = vld [vmem:[%s1341_s7 + $0x28] sm:$0xff]  }
  0x1e   : > { %287 = vst.msk [vmem:[#allocation2 + $0xf0] sm:$0xff] %vm256_vm0, %v1217_v2  ;;  %288 = vst.msk [vmem:[#allocation2 + $0xf8] sm:$0xff] %vm256_vm0, %v1217_v2  ;;  %v1130_v12 = vld [vmem:[%s1341_s7 + $0x60] sm:$0xff]   ;;  %v1132_v14 = vld [vmem:[%s1341_s7 + $0x68] sm:$0xff]   ;;  %p1147_p5 = pnand %p1146_p3, %p1140_p0 }
  0x1f   : > { %v1133_v15 = vld [vmem:[%s1341_s7 + $0x30] sm:$0xff]   ;;  %v1135_v17 = vld [vmem:[%s1341_s7 + $0x38] sm:$0xff]   ;;  %v305_v23 = vld [vmem:[#allocation2 + $0x80] sm:$0xff] }
  0x20   : > { %v1134_v16 = vld [vmem:[%s1341_s7 + $0x70] sm:$0xff]   ;;  %v1136_v18 = vld [vmem:[%s1341_s7 + $0x78] sm:$0xff]   ;;  %v306_v34 = vld [vmem:[#allocation2 + $0x88] sm:$0xff] }
  0x21   : > { %v307_v20 = vld [vmem:[#allocation2 + $0x90] sm:$0xff]  ;;  %v308_v28 = vld [vmem:[#allocation2 + $0x98] sm:$0xff]  ;;  %v309_v48 = vld [vmem:[#allocation2 + $0xa0] sm:$0xff] }
  0x22   : > { %v295_v43 = vld [vmem:[#allocation2 + $0x30] sm:$0xff]  ;;  %v296_v49 = vld [vmem:[#allocation2 + $0x38] sm:$0xff]  ;;  %v310_v60 = vld [vmem:[#allocation2 + $0xa8] sm:$0xff] }
  0x23   : > { %1030 = vmatmul.mubr.msk.bf16.gmra.mrb[4].mxu0 %vm256_vm0, %v1127_v9  ;;  %v311_v44 = vld [vmem:[#allocation2 + $0xb0] sm:$0xff]  ;;  %v312_v53 = vld [vmem:[#allocation2 + $0xb8] sm:$0xff] }
  0x24   : > { %1046 = vmatmul.mubr.msk.bf16.gmra.mrb[4].mxu1 %vm256_vm0, %v1128_v10  ;;  %1033 = vmatprep.mubr.msk.bf16.mxu0 %vm256_vm0, %v1129_v11 }
  0x25   : > { %1049 = vmatprep.mubr.msk.bf16.mxu1 %vm256_vm0, %v1130_v12 }
  0x2b   : > { %1034 = vmatmul.mubr.msk.bf16.gmra.mrb[8].mxu0 %vm256_vm0, %v1131_v13 }
  0x2c   : > { %1050 = vmatmul.mubr.msk.bf16.gmra.mrb[8].mxu1 %vm256_vm0, %v1132_v14  ;;  %1037 = vmatprep.mubr.msk.bf16.mxu0 %vm256_vm0, %v1133_v15 }
  0x2d   : > { %1053 = vmatprep.mubr.msk.bf16.mxu1 %vm256_vm0, %v1134_v16 }
  0x33   : > { %1038 = vmatmul.mubr.msk.bf16.gmra.mrb[12].mxu0 %vm256_vm0, %v1135_v17 }
  0x34   : > { %1054 = vmatmul.mubr.msk.bf16.gmra.mrb[12].mxu1 %vm256_vm0, %v1136_v18 }
  0xee   : > { %v1027_v22 = vpop.f32.mrb[0].mxu0 }
  0xef   : > { %v661_v25 = vadd.f32 %v1027_v22, %v291_v19  ;;  %v1043_v26 = vpop.f32.mrb[0].mxu1  ;;  %v532_v27 = vpop.f32.mrb[1].mxu0  ;;  %v299_v19 = vld [vmem:[#allocation2 + $0x50] sm:$0xff]  ;;  %v297_v22 = vld [vmem:[#allocation2 + $0x40] sm:$0xff] }
  0xf0   : > { %v677_v30 = vadd.f32 %v1043_v26, %v307_v20  ;;  %v659_v31 = vadd.f32 %v532_v27, %v289_v21  ;;  %v596_v32 = vpop.f32.mrb[1].mxu1  ;;  %v1028_v33 = vpop.f32.mrb[2].mxu0  ;;  %v315_v21 = vld [vmem:[#allocation2 + $0xd0] sm:$0xff] }
  0xf1   : > { %693 = vst.msk [vmem:[#allocation2 + $0x10] sm:$0xff] %vm256_vm0, %v661_v25  ;;  %v675_v35 = vadd.f32 %v596_v32, %v305_v23  ;;  %v662_v36 = vadd.f32 %v1028_v33, %v292_v24  ;;  %v1044_v37 = vpop.f32.mrb[2].mxu1  ;;  %v535_v38 = vpop.f32.mrb[3].mxu0  ;;  %v313_v24 = vld [vmem:[#allocation2 + $0xc0] sm:$0xff]  ;;  %v300_v25 = vld [vmem:[#allocation2 + $0x58] sm:$0xff] }
  0xf2   : > { %709 = vst.msk [vmem:[#allocation2 + $0x90] sm:$0xff] %vm256_vm0, %v677_v30  ;;  %691 = vst.msk [vmem:[#allocation2] sm:$0xff] %vm256_vm0, %v659_v31  ;;  %v678_v39 = vadd.f32 %v1044_v37, %v308_v28  ;;  %v660_v40 = vadd.f32 %v535_v38, %v290_v29  ;;  %v599_v41 = vpop.f32.mrb[3].mxu1  ;;  %v316_v29 = vld [vmem:[#allocation2 + $0xd8] sm:$0xff]  ;;  %v298_v30 = vld [vmem:[#allocation2 + $0x48] sm:$0xff] }
  0xf3   : > { %707 = vst.msk [vmem:[#allocation2 + $0x80] sm:$0xff] %vm256_vm0, %v675_v35  ;;  %694 = vst.msk [vmem:[#allocation2 + $0x18] sm:$0xff] %vm256_vm0, %v662_v36  ;;  %v676_v42 = vadd.f32 %v599_v41, %v306_v34  ;;  %v314_v36 = vld [vmem:[#allocation2 + $0xc8] sm:$0xff] }
  0xf4   : > { %710 = vst.msk [vmem:[#allocation2 + $0x98] sm:$0xff] %vm256_vm0, %v678_v39  ;;  %692 = vst.msk [vmem:[#allocation2 + $0x8] sm:$0xff] %vm256_vm0, %v660_v40 }
  0xf5   : > { %708 = vst.msk [vmem:[#allocation2 + $0x88] sm:$0xff] %vm256_vm0, %v676_v42 }
  0xf6   : > { %v1031_v47 = vpop.f32.mrb[4].mxu0 }
  0xf7   : > { %v665_v50 = vadd.f32 %v1031_v47, %v295_v43  ;;  %v1047_v51 = vpop.f32.mrb[4].mxu1  ;;  %v548_v52 = vpop.f32.mrb[5].mxu0 }
  0xf8   : > { %v728_v55 = vld [vmem:[#allocation2 + $0x10] sm:$0xff]  ;;  %v681_v56 = vadd.f32 %v1047_v51, %v311_v44  ;;  %v663_v57 = vadd.f32 %v548_v52, %v293_v45  ;;  %v612_v58 = vpop.f32.mrb[5].mxu1  ;;  %v1032_v59 = vpop.f32.mrb[6].mxu0 }
  0xf9   : > { %v767_v61 = vadd.f32 %v1391_v46, %v728_v55  ;;  %v744_v62 = vld [vmem:[#allocation2 + $0x90] sm:$0xff]  ;;  %v726_v63 = vld [vmem:[#allocation2] sm:$0xff]  ;;  %697 = vst.msk [vmem:[#allocation2 + $0x30] sm:$0xff] %vm256_vm0, %v665_v50  ;;  %v679_v0 = vadd.f32 %v612_v58, %v309_v48  ;;  %v666_v1 = vadd.f32 %v1032_v59, %v296_v49  ;;  %v1048_v2 = vpop.f32.mrb[6].mxu1  ;;  %v551_v3 = vpop.f32.mrb[7].mxu0 }
  0xfa   : > { %v783_v4 = vadd.f32 %v1391_v46, %v744_v62  ;;  %v765_v5 = vadd.f32 %v1391_v46, %v726_v63  ;;  %v742_v6 = vld [vmem:[#allocation2 + $0x80] sm:$0xff]  ;;  %v729_v7 = vld [vmem:[#allocation2 + $0x18] sm:$0xff]  ;;  %713 = vst.msk [vmem:[#allocation2 + $0xb0] sm:$0xff] %vm256_vm0, %v681_v56  ;;  %695 = vst.msk [vmem:[#allocation2 + $0x20] sm:$0xff] %vm256_vm0, %v663_v57  ;;  %v682_v8 = vadd.f32 %v1048_v2, %v312_v53  ;;  %v615_v10 = vpop.f32.mrb[7].mxu1 }
  0xfb   : > { %v664_v9 = vadd.f32 %v551_v3, %v294_v54  ;;  %799 = vst.msk [vmem:[%s1400_s18 + $0x10] sm:$0xff] %vm256_vm0, %v767_v61  ;;  %v781_v11 = vadd.f32 %v1391_v46, %v742_v6  ;;  %v768_v12 = vadd.f32 %v1391_v46, %v729_v7  ;;  %v745_v13 = vld [vmem:[#allocation2 + $0x98] sm:$0xff]  ;;  %v727_v14 = vld [vmem:[#allocation2 + $0x8] sm:$0xff]  ;;  %711 = vst.msk [vmem:[#allocation2 + $0xa0] sm:$0xff] %vm256_vm0, %v679_v0 }
  0xfc   : > { %698 = vst.msk [vmem:[#allocation2 + $0x38] sm:$0xff] %vm256_vm0, %v666_v1  ;;  %v680_v15 = vadd.f32 %v615_v10, %v310_v60  ;;  %815 = vst.msk [vmem:[%s1400_s18 + $0x90] sm:$0xff] %vm256_vm0, %v783_v4  ;;  %v784_v16 = vadd.f32 %v1391_v46, %v745_v13  ;;  %v766_v17 = vadd.f32 %v1391_v46, %v727_v14  ;;  %v743_v18 = vld [vmem:[#allocation2 + $0x88] sm:$0xff]  ;;  %v303_v60 = vld [vmem:[#allocation2 + $0x70] sm:$0xff] }
  0xfd   : > { %797 = vst.msk [vmem:[%s1400_s18] sm:$0xff] %vm256_vm0, %v765_v5  ;;  %714 = vst.msk [vmem:[#allocation2 + $0xb8] sm:$0xff] %vm256_vm0, %v682_v8  ;;  %v782_v20 = vadd.f32 %v1391_v46, %v743_v18  ;;  %v319_v62 = vld [vmem:[#allocation2 + $0xf0] sm:$0xff]  ;;  %v301_v63 = vld [vmem:[#allocation2 + $0x60] sm:$0xff] }
  0xfe   : > { %696 = vst.msk [vmem:[#allocation2 + $0x28] sm:$0xff] %vm256_vm0, %v664_v9  ;;  %813 = vst.msk [vmem:[%s1400_s18 + $0x80] sm:$0xff] %vm256_vm0, %v781_v11  ;;  %v1035_v23 = vpop.f32.mrb[8].mxu0  ;;  %v317_v1 = vld [vmem:[#allocation2 + $0xe0] sm:$0xff]  ;;  %v304_v2 = vld [vmem:[#allocation2 + $0x78] sm:$0xff] }
  0xff   : > { %800 = vst.msk [vmem:[%s1400_s18 + $0x18] sm:$0xff] %vm256_vm0, %v768_v12  ;;  %712 = vst.msk [vmem:[#allocation2 + $0xa8] sm:$0xff] %vm256_vm0, %v680_v15  ;;  %v669_v26 = vadd.f32 %v1035_v23, %v299_v19  ;;  %v1051_v27 = vpop.f32.mrb[8].mxu1  ;;  %v564_v28 = vpop.f32.mrb[9].mxu0  ;;  %v320_v6 = vld [vmem:[#allocation2 + $0xf8] sm:$0xff]  ;;  %v302_v7 = vld [vmem:[#allocation2 + $0x68] sm:$0xff] }
 0x100   : > { %816 = vst.msk [vmem:[%s1400_s18 + $0x98] sm:$0xff] %vm256_vm0, %v784_v16  ;;  %798 = vst.msk [vmem:[%s1400_s18 + $0x8] sm:$0xff] %vm256_vm0, %v766_v17  ;;  %v732_v31 = vld [vmem:[#allocation2 + $0x30] sm:$0xff]  ;;  %v685_v32 = vadd.f32 %v1051_v27, %v315_v21  ;;  %v667_v33 = vadd.f32 %v564_v28, %v297_v22  ;;  %v628_v34 = vpop.f32.mrb[9].mxu1  ;;  %v1036_v35 = vpop.f32.mrb[10].mxu0  ;;  %v318_v13 = vld [vmem:[#allocation2 + $0xe8] sm:$0xff] }
 0x101   : > { %814 = vst.msk [vmem:[%s1400_s18 + $0x88] sm:$0xff] %vm256_vm0, %v782_v20  ;;  %v771_v37 = vadd.f32 %v1391_v46, %v732_v31  ;;  %v748_v38 = vld [vmem:[#allocation2 + $0xb0] sm:$0xff]  ;;  %v730_v39 = vld [vmem:[#allocation2 + $0x20] sm:$0xff]  ;;  %701 = vst.msk [vmem:[#allocation2 + $0x50] sm:$0xff] %vm256_vm0, %v669_v26  ;;  %v683_v40 = vadd.f32 %v628_v34, %v313_v24  ;;  %v670_v41 = vadd.f32 %v1036_v35, %v300_v25  ;;  %v1052_v42 = vpop.f32.mrb[10].mxu1  ;;  %v567_v43 = vpop.f32.mrb[11].mxu0 }
 0x102   : > { %v787_v44 = vadd.f32 %v1391_v46, %v748_v38  ;;  %v769_v45 = vadd.f32 %v1391_v46, %v730_v39  ;;  %v746_v47 = vld [vmem:[#allocation2 + $0xa0] sm:$0xff]  ;;  %717 = vst.msk [vmem:[#allocation2 + $0xd0] sm:$0xff] %vm256_vm0, %v685_v32  ;;  %699 = vst.msk [vmem:[#allocation2 + $0x40] sm:$0xff] %vm256_vm0, %v667_v33  ;;  %v686_v49 = vadd.f32 %v1052_v42, %v316_v29  ;;  %v631_v51 = vpop.f32.mrb[11].mxu1 }
 0x103   : > { %v733_v48 = vld [vmem:[#allocation2 + $0x38] sm:$0xff]  ;;  %v668_v50 = vadd.f32 %v567_v43, %v298_v30  ;;  %803 = vst.msk [vmem:[%s1400_s18 + $0x30] sm:$0xff] %vm256_vm0, %v771_v37  ;;  %v785_v52 = vadd.f32 %v1391_v46, %v746_v47  ;;  %715 = vst.msk [vmem:[#allocation2 + $0xc0] sm:$0xff] %vm256_vm0, %v683_v40  ;;  %v684_v56 = vadd.f32 %v631_v51, %v314_v36 }
 0x104   : > { %v772_v53 = vadd.f32 %v1391_v46, %v733_v48  ;;  %v749_v54 = vld [vmem:[#allocation2 + $0xb8] sm:$0xff]  ;;  %702 = vst.msk [vmem:[#allocation2 + $0x58] sm:$0xff] %vm256_vm0, %v670_v41  ;;  %819 = vst.msk [vmem:[%s1400_s18 + $0xb0] sm:$0xff] %vm256_vm0, %v787_v44 }
 0x105   : > { %v731_v55 = vld [vmem:[#allocation2 + $0x28] sm:$0xff]  ;;  %801 = vst.msk [vmem:[%s1400_s18 + $0x20] sm:$0xff] %vm256_vm0, %v769_v45  ;;  %v788_v57 = vadd.f32 %v1391_v46, %v749_v54  ;;  %718 = vst.msk [vmem:[#allocation2 + $0xd8] sm:$0xff] %vm256_vm0, %v686_v49 }
 0x106   : > { %v770_v58 = vadd.f32 %v1391_v46, %v731_v55  ;;  %v747_v59 = vld [vmem:[#allocation2 + $0xa8] sm:$0xff]  ;;  %700 = vst.msk [vmem:[#allocation2 + $0x48] sm:$0xff] %vm256_vm0, %v668_v50  ;;  %817 = vst.msk [vmem:[%s1400_s18 + $0xa0] sm:$0xff] %vm256_vm0, %v785_v52  ;;  %v1039_v0 = vpop.f32.mrb[12].mxu0 }
 0x107   : > { %804 = vst.msk [vmem:[%s1400_s18 + $0x38] sm:$0xff] %vm256_vm0, %v772_v53  ;;  %v786_v61 = vadd.f32 %v1391_v46, %v747_v59  ;;  %716 = vst.msk [vmem:[#allocation2 + $0xc8] sm:$0xff] %vm256_vm0, %v684_v56  ;;  %v673_v3 = vadd.f32 %v1039_v0, %v303_v60  ;;  %v1055_v4 = vpop.f32.mrb[12].mxu1  ;;  %v580_v5 = vpop.f32.mrb[13].mxu0 }
 0x108   : > { %820 = vst.msk [vmem:[%s1400_s18 + $0xb8] sm:$0xff] %vm256_vm0, %v788_v57  ;;  %802 = vst.msk [vmem:[%s1400_s18 + $0x28] sm:$0xff] %vm256_vm0, %v770_v58  ;;  %v736_v8 = vld [vmem:[#allocation2 + $0x50] sm:$0xff]  ;;  %v689_v9 = vadd.f32 %v1055_v4, %v319_v62  ;;  %v671_v10 = vadd.f32 %v580_v5, %v301_v63  ;;  %v644_v11 = vpop.f32.mrb[13].mxu1  ;;  %v1040_v12 = vpop.f32.mrb[14].mxu0 }
 0x109   : > { %818 = vst.msk [vmem:[%s1400_s18 + $0xa8] sm:$0xff] %vm256_vm0, %v786_v61  ;;  %v775_v14 = vadd.f32 %v1391_v46, %v736_v8  ;;  %v752_v15 = vld [vmem:[#allocation2 + $0xd0] sm:$0xff]  ;;  %v734_v16 = vld [vmem:[#allocation2 + $0x40] sm:$0xff]  ;;  %705 = vst.msk [vmem:[#allocation2 + $0x70] sm:$0xff] %vm256_vm0, %v673_v3  ;;  %v687_v17 = vadd.f32 %v644_v11, %v317_v1  ;;  %v674_v18 = vadd.f32 %v1040_v12, %v304_v2  ;;  %v1056_v19 = vpop.f32.mrb[14].mxu1  ;;  %v583_v20 = vpop.f32.mrb[15].mxu0 }
 0x10a   : > { %v791_v21 = vadd.f32 %v1391_v46, %v752_v15  ;;  %v773_v22 = vadd.f32 %v1391_v46, %v734_v16  ;;  %v750_v23 = vld [vmem:[#allocation2 + $0xc0] sm:$0xff]  ;;  %721 = vst.msk [vmem:[#allocation2 + $0xf0] sm:$0xff] %vm256_vm0, %v689_v9  ;;  %703 = vst.msk [vmem:[#allocation2 + $0x60] sm:$0xff] %vm256_vm0, %v671_v10  ;;  %v690_v25 = vadd.f32 %v1056_v19, %v320_v6  ;;  %v647_v27 = vpop.f32.mrb[15].mxu1 }
 0x10b   : > { %v737_v24 = vld [vmem:[#allocation2 + $0x58] sm:$0xff]  ;;  %v672_v26 = vadd.f32 %v583_v20, %v302_v7  ;;  %807 = vst.msk [vmem:[%s1400_s18 + $0x50] sm:$0xff] %vm256_vm0, %v775_v14  ;;  %v789_v28 = vadd.f32 %v1391_v46, %v750_v23  ;;  %719 = vst.msk [vmem:[#allocation2 + $0xe0] sm:$0xff] %vm256_vm0, %v687_v17  ;;  %v688_v32 = vadd.f32 %v647_v27, %v318_v13 }
 0x10c   : > { %v776_v29 = vadd.f32 %v1391_v46, %v737_v24  ;;  %v753_v30 = vld [vmem:[#allocation2 + $0xd8] sm:$0xff]  ;;  %706 = vst.msk [vmem:[#allocation2 + $0x78] sm:$0xff] %vm256_vm0, %v674_v18  ;;  %823 = vst.msk [vmem:[%s1400_s18 + $0xd0] sm:$0xff] %vm256_vm0, %v791_v21 }
 0x10d   : > { %v735_v31 = vld [vmem:[#allocation2 + $0x48] sm:$0xff]  ;;  %805 = vst.msk [vmem:[%s1400_s18 + $0x40] sm:$0xff] %vm256_vm0, %v773_v22  ;;  %v792_v33 = vadd.f32 %v1391_v46, %v753_v30  ;;  %722 = vst.msk [vmem:[#allocation2 + $0xf8] sm:$0xff] %vm256_vm0, %v690_v25 }
 0x10e   : > { %v774_v34 = vadd.f32 %v1391_v46, %v735_v31  ;;  %v751_v35 = vld [vmem:[#allocation2 + $0xc8] sm:$0xff]  ;;  %704 = vst.msk [vmem:[#allocation2 + $0x68] sm:$0xff] %vm256_vm0, %v672_v26  ;;  %821 = vst.msk [vmem:[%s1400_s18 + $0xc0] sm:$0xff] %vm256_vm0, %v789_v28 }
 0x10f   : > { %808 = vst.msk [vmem:[%s1400_s18 + $0x58] sm:$0xff] %vm256_vm0, %v776_v29  ;;  %v790_v36 = vadd.f32 %v1391_v46, %v751_v35  ;;  %720 = vst.msk [vmem:[#allocation2 + $0xe8] sm:$0xff] %vm256_vm0, %v688_v32 }
 0x110   : > { %824 = vst.msk [vmem:[%s1400_s18 + $0xd8] sm:$0xff] %vm256_vm0, %v792_v33  ;;  %806 = vst.msk [vmem:[%s1400_s18 + $0x48] sm:$0xff] %vm256_vm0, %v774_v34  ;;  %v740_v37 = vld [vmem:[#allocation2 + $0x70] sm:$0xff] }
 0x111   : > { %822 = vst.msk [vmem:[%s1400_s18 + $0xc8] sm:$0xff] %vm256_vm0, %v790_v36  ;;  %v779_v38 = vadd.f32 %v1391_v46, %v740_v37  ;;  %v756_v39 = vld [vmem:[#allocation2 + $0xf0] sm:$0xff]  ;;  %v738_v40 = vld [vmem:[#allocation2 + $0x60] sm:$0xff] }
 0x112   : > { %v795_v41 = vadd.f32 %v1391_v46, %v756_v39  ;;  %v777_v42 = vadd.f32 %v1391_v46, %v738_v40  ;;  %v754_v43 = vld [vmem:[#allocation2 + $0xe0] sm:$0xff] }
 0x113   : > { %v741_v44 = vld [vmem:[#allocation2 + $0x78] sm:$0xff]  ;;  %811 = vst.msk [vmem:[%s1400_s18 + $0x70] sm:$0xff] %vm256_vm0, %v779_v38  ;;  %v793_v45 = vadd.f32 %v1391_v46, %v754_v43 }
 0x114   : > { %v780_v47 = vadd.f32 %v1391_v46, %v741_v44  ;;  %v757_v48 = vld [vmem:[#allocation2 + $0xf8] sm:$0xff]  ;;  %827 = vst.msk [vmem:[%s1400_s18 + $0xf0] sm:$0xff] %vm256_vm0, %v795_v41  ;;  %809 = vst.msk [vmem:[%s1400_s18 + $0x60] sm:$0xff] %vm256_vm0, %v777_v42 }
 0x115   : > { %v739_v49 = vld [vmem:[#allocation2 + $0x68] sm:$0xff]  ;;  %v796_v50 = vadd.f32 %v1391_v46, %v757_v48  ;;  %825 = vst.msk [vmem:[%s1400_s18 + $0xe0] sm:$0xff] %vm256_vm0, %v793_v45 }
 0x116   : > { %v778_v51 = vadd.f32 %v1391_v46, %v739_v49  ;;  %v755_v52 = vld [vmem:[#allocation2 + $0xe8] sm:$0xff]  ;;  %812 = vst.msk [vmem:[%s1400_s18 + $0x78] sm:$0xff] %vm256_vm0, %v780_v47 }
 0x117   : > { %v794_v53 = vadd.f32 %v1391_v46, %v755_v52  ;;  %828 = vst.msk [vmem:[%s1400_s18 + $0xf8] sm:$0xff] %vm256_vm0, %v796_v50 }
 0x118   : > { %810 = vst.msk [vmem:[%s1400_s18 + $0x68] sm:$0xff] %vm256_vm0, %v778_v51 }
 0x119   : > { %826 = vst.msk [vmem:[%s1400_s18 + $0xe8] sm:$0xff] %vm256_vm0, %v794_v53 }
 0x11a   : > { %1150 = shalt.err (!%p1147_p5)
}
 0x11b   : > { %s1151_s5 = scalar_lea.hbm %s1510_s26, 4096  ;;  %s1155_s8 = scalar_lea.hbm %s1576_s3, 8192 }
 0x11c   : > { %p1152_p6 = scmp.ne.s32.totalorder %s1510_s26, %s1151_s5  ;;  %p1156_p10 = scmp.lt.u32.totalorder %s1510_s26, %s1576_s3 }
 0x11d   : > { %p1157_p11 = scmp.lt.u32.totalorder %s1155_s8, %s1151_s5  ;;  %p1159_p13 = scmp.lt.u32.totalorder %s1151_s5, %s1510_s26 }
 0x11e   : > { %p1153_p7 = pnand %p1152_p6, %p1281_p4 }
 0x11f   : > { %p1158_p12 = por %p1157_p11, %p1156_p10 }
 0x120   : > { %p1154_p9 = pneg %p1153_p7 }
 0x121   : > { %p1160_p0 = por %p1159_p13, %p1158_p12 }
 0x123   : > { %p1161_p1 = pnand %p1160_p0, %p1154_p9 }
 0x125   : > { %1164 = shalt.err (!%p1161_p1)
}
 0x126   : > { %s1219_s11 = smov 128   ;;  %s1220_s18 = smov 8  }
 0x127   : > { %1061 = dma.vmem_to_hbm [thread:$0]  (%p1281_p4), %s1512_s21, 4096, %s1510_s26, %s1527_s27, %s1219_s11, %s1219_s11, %s1220_s18  }
 0x128 PF: > { %p1067_p2 = scmp.ge.s32.totalorder %s1215_s17, 2  ;;  %s859_s19 = sand.u32 1, %s1195_s12  }
 0x129   : > { %s860_s15 = scalar_lea.sflag [#allocation4], %s859_s19 }
 0x12a   : > { %p1064_p3 = pnand %p1067_p2, %p1288_p8 }
 0x12c   : > { %1190 = dma.done.wait (!%p1064_p3), %s860_s15, 4096  }
 0x12d   : > { %1192 = vsyncadd (!%p1064_p3), %s860_s15, 4294963200  ;;  %s16_s17 = sadd.s32 1, %s1215_s17   ;;  %s1579_s12 = smov %s1199_s13 }
 0x12e   : > { %p13_p5 = scmp.ge.s32.totalorder %s16_s17, 4   ;;  %s1580_s13 = smov %s1203_s14 }
 0x12f   : > { %s1581_s14 = smov %s1294_s25  ;;  %s1582_s15 = smov %s1211_s16 }
 0x130   : > { %s1583_s16 = smov %s1585_s20  ;;  %15 = sbr.rel (!%p13_p5) target bundleno = 4 (0x4), region = 81 }
 0x137   :  { %865 = vsyncpa [#allocation4], 1 }
 0x138   :  { %867 = vsyncpa [#allocation4 + $0x1], 1 }

</bundles_post_ra>
